<compile_context>
chip_gen: v6e
topology: v6e:2x2x1
jax: 0.10.0
libtpu: 0.0.40
codegen_flags: <defaults>
</compile_context>

<pallas_src>
import functools

import jax
import jax.numpy as jnp
import numpy as np
from jax.experimental import pallas as pl
from jax.experimental.pallas import tpu as pltpu


def _vq_kernel(z_ref, wq_ref, bq_ref, embt_ref, esq_ref, wout_ref,
               out_ref, idx_ref, loss_ref, *, pack):
    """One tile of `rows` packed rows (= rows * pack tokens).

    z_ref    : (rows, pack*dim)      packed input tokens
    wq_ref   : (pack*dim, pack*Dc)   block-diag quant_proj weight
    bq_ref   : (1, pack*Dc)          tiled quant_proj bias
    embt_ref : (pack*Dc, pack*K)     block-diag codebook^T
    esq_ref  : (1, pack*K)           tiled ||e_k||^2
    wout_ref : (pack*K, pack*dim)    block-diag (emb @ Wp^T + bp)
    out_ref  : (rows, pack*dim)      straight-through output, lane-dense
    idx_ref  : (rows, pack)          argmin codebook indices, packed like z
    loss_ref : (1, 1, 128)           per-tile commitment-loss partial (lane-dense)
    """
    rows = z_ref.shape[0]
    K = embt_ref.shape[1] // pack

    z = z_ref[...]                                                     # (rows, p*dim)
    # quant_proj for all `pack` tokens of each row in one contraction-128 matmul
    zp = jnp.dot(z, wq_ref[...],
                 preferred_element_type=jnp.float32) + bq_ref[...]     # (rows, p*Dc)

    # ONE MXU push for all pack slots: (rows, p*Dc) @ (p*Dc, p*K)
    ze_all = jnp.dot(zp, embt_ref[...],
                     preferred_element_type=jnp.float32)               # (rows, p*K)
    # esq broadcast happens exactly once per tile (hoisted out of the slot loop)
    d_all = esq_ref[...] - 2.0 * ze_all                                # (rows, p*K)

    iota_k = jax.lax.broadcasted_iota(jnp.int32, (rows, K), 1)
    lane_p = jax.lax.broadcasted_iota(jnp.int32, (1, pack), 1)

    onehot_parts = []
    idx_pack = jnp.zeros((rows, pack), jnp.int32)
    min_sum = jnp.zeros((rows, 1), jnp.float32)

    for j in range(pack):  # static unroll, pack is small (128 // dim)
        d_j = d_all[:, j * K:(j + 1) * K]                              # aligned lane slice
        min_j = jnp.min(d_j, axis=1, keepdims=True)                    # (rows, 1)
        # first-occurrence argmin (matches torch/jnp argmin tie-break)
        idx_j = jnp.min(jnp.where(d_j == min_j, iota_k, K),
                        axis=1, keepdims=True)                         # (rows, 1) int32
        onehot_parts.append((iota_k == idx_j).astype(jnp.float32))     # (rows, K)
        idx_pack = jnp.where(lane_p == j, idx_j, idx_pack)
        min_sum = min_sum + min_j

    onehot_all = (onehot_parts[0] if pack == 1
                  else jnp.concatenate(onehot_parts, axis=1))          # (rows, p*K)

    # single fused post_quant_proj(embedding[idx]) matmul, lane-dense output
    out = jnp.dot(onehot_all, wout_ref[...],
                  preferred_element_type=jnp.float32)                  # (rows, p*dim)
    out_ref[...] = out.astype(out_ref.dtype)
    idx_ref[...] = idx_pack

    # commitment-loss partial: sum ||z_q - z_p||^2 = sum ||z_p||^2 + sum min_d'
    tile_loss = (jnp.sum(zp * zp, keepdims=True)
                 + jnp.sum(min_sum, keepdims=True))                    # (1, 1)
    loss_ref[...] = jnp.broadcast_to(tile_loss, loss_ref.shape)        # lane-dense row


def _vmem_budget_bytes():
    """Generation-aware VMEM budget (v5e/v6e: 128 MiB, v7x: 64 MiB per TC)."""
    try:
        cap = int(pltpu.get_tpu_info().vmem_capacity_bytes)
        if cap > 0:
            return min((cap * 3) // 4, 96 * 1024 * 1024)
    except Exception:
        pass
    return 48 * 1024 * 1024  # conservative fallback: assume smallest-VMEM gen (v7x)


def _tile_vmem_bytes(rows, p, dim, Dc, K):
    """Rough upper bound of per-tile VMEM (IO double-buffers + weights + temps)."""
    f = 4  # f32 bytes
    io = 2 * rows * p * (2 * dim + 1) * f                     # z + out + idx, x2 buffers
    weights = 2 * f * (p * dim * p * Dc + p * Dc * p * K + p * K * p * dim
                       + p * Dc + p * K + 128)
    temps = f * rows * (p * Dc + 4 * p * K + 2 * p * dim + 16)  # zp, d_all, one-hots, out
    return io + weights + temps


def _choose_tm(M, p, dim, Dc, K, budget, tm_cap):
    """Largest token tile that divides M, keeps (8,128) alignment, fits VMEM,
    and (preferably) leaves an even number >= 2 of grid steps for v7x megacore."""
    align = 8 * p
    cap = min(tm_cap, M)
    fits = []
    t = align
    while t <= cap:
        if M % t == 0 and _tile_vmem_bytes(t // p, p, dim, Dc, K) <= (budget * 3) // 4:
            fits.append(t)
        t += align
    if not fits:
        return align
    even = [t for t in fits if (M // t) >= 2 and (M // t) % 2 == 0]
    multi = [t for t in fits if (M // t) >= 2]
    if even:
        return max(even)
    if multi:
        return max(multi)
    return max(fits)


def vector_quantize(z, wq_t, bq, emb, wp_t, bp, *, beta=0.25,
                    commitment_weight=1.0, tm_cap=8192):
    """z: (B, N, dim) f32.  Returns (z_q (B,N,dim), idxs (B,N) int32, loss scalar)."""
    B, N, dim = z.shape
    K, Dc = emb.shape
    M = B * N

    # lane-packing factor: p tokens share one 128-lane row
    p = 128 // dim if (dim <= 128 and 128 % dim == 0) else 1
    align = 8 * p
    assert M % align == 0, "B*N must be a multiple of 8*pack (pad tokens host-side)"

    budget = _vmem_budget_bytes()
    tm = _choose_tm(M, p, dim, Dc, K, budget, tm_cap)
    rows = tm // p          # packed rows per tile
    Mp = M // p             # packed rows total
    n_tiles = M // tm

    # ---- grid-invariant precompute (hoisted out of the kernel, plain XLA) ----
    f32 = jnp.float32
    eye_p = jnp.eye(p, dtype=f32)
    wq4 = jnp.kron(eye_p, wq_t.astype(f32))                    # (p*dim, p*Dc)
    bq4 = jnp.tile(bq.astype(f32), p).reshape(1, p * Dc)       # (1, p*Dc)
    emb32 = emb.astype(f32)
    e_sq = jnp.sum(emb32 * emb32, axis=1).reshape(1, K)        # (1, K)
    esq_t = jnp.tile(e_sq, (1, p))                             # (1, p*K)
    embt4 = jnp.kron(eye_p, emb32.T)                           # (p*Dc, p*K)
    emb_post = emb32 @ wp_t.astype(f32) + bp.astype(f32)[None, :]
    wout = jnp.kron(eye_p, emb_post)                           # (p*K, p*dim)

    z_packed = z.reshape(Mp, p * dim)                          # free, row-major

    kernel = functools.partial(_vq_kernel, pack=p)

    out, idx, loss_parts = pl.pallas_call(
        kernel,
        out_shape=(
            jax.ShapeDtypeStruct((Mp, p * dim), z.dtype),
            jax.ShapeDtypeStruct((Mp, p), jnp.int32),
            jax.ShapeDtypeStruct((n_tiles, 1, 128), jnp.float32),
        ),
        grid_spec=pltpu.PrefetchScalarGridSpec(
            num_scalar_prefetch=0,
            grid=(n_tiles,),
            in_specs=[
                pl.BlockSpec((rows, p * dim), lambda i: (i, 0)),      # packed z tile
                pl.BlockSpec((p * dim, p * Dc), lambda i: (0, 0)),    # block-diag Wq^T
                pl.BlockSpec((1, p * Dc), lambda i: (0, 0)),          # tiled bq
                pl.BlockSpec((p * Dc, p * K), lambda i: (0, 0)),      # block-diag emb^T
                pl.BlockSpec((1, p * K), lambda i: (0, 0)),           # tiled ||e||^2
                pl.BlockSpec((p * K, p * dim), lambda i: (0, 0)),     # block-diag emb@Wp^T+bp
            ],
            out_specs=[
                pl.BlockSpec((rows, p * dim), lambda i: (i, 0)),      # lane-dense out
                pl.BlockSpec((rows, p), lambda i: (i, 0)),            # packed indices
                pl.BlockSpec((1, 1, 128), lambda i: (i, 0, 0)),       # lane-dense loss row
            ],
        ),
        compiler_params=pltpu.CompilerParams(
            dimension_semantics=("parallel",),                        # v7x: shard tiles across TCs
            vmem_limit_bytes=int(budget),
        ),
    )(z_packed, wq4, bq4, embt4, esq_t, wout)

    loss_scale = commitment_weight * (1.0 + beta) / float(M * Dc)
    loss = jnp.sum(loss_parts[:, 0, 0]) * loss_scale
    return out.reshape(B, N, dim), idx.reshape(B, N), loss


def _reference_f64(z, wq_t, bq, emb, wp_t, bp, beta, cw):
    """Float64 NumPy reference, faithful to the PyTorch forward."""
    z, wq_t, bq, emb, wp_t, bp = [
        np.asarray(a, dtype=np.float64) for a in (z, wq_t, bq, emb, wp_t, bp)]
    B, N, dim = z.shape
    zp = z.reshape(-1, dim) @ wq_t + bq
    d = (np.sum(zp ** 2, -1, keepdims=True) + np.sum(emb ** 2, -1)[None, :]
         - 2.0 * (zp @ emb.T))
    idx = np.argmin(d, axis=-1)
    zq = emb[idx]
    loss = cw * (1.0 + beta) * np.mean((zq - zp) ** 2)
    out = (zq @ wp_t + bp).reshape(B, N, dim)
    return out, idx.reshape(B, N).astype(np.int32), loss


if __name__ == "__main__":
    # Module config (dim != codebook_dim so both projections are exercised)
    dim, codebook_dim, codebook_size = 32, 16, 256
    beta, commitment_weight = 0.25, 1.0
    B, N = 2, 128

    key = jax.random.PRNGKey(0)
    kz, kwq, kbq, ke, kwp, kbp = jax.random.split(key, 6)

    z = jax.random.normal(kz, (B, N, dim), dtype=jnp.float32)

    # Deterministic parameter init (shapes as in the PyTorch module)
    wq_t = jax.random.normal(kwq, (dim, codebook_dim), jnp.float32) * 0.1   # quant_proj.weight.T
    bq = jax.random.normal(kbq, (codebook_dim,), jnp.float32) * 0.1
    emb = jax.random.uniform(ke, (codebook_size, codebook_dim), jnp.float32,
                             minval=-1.0 / codebook_size, maxval=1.0 / codebook_size)
    wp_t = jax.random.normal(kwp, (codebook_dim, dim), jnp.float32) * 0.1   # post_quant_proj.weight.T
    bp = jax.random.normal(kbp, (dim,), jnp.float32) * 0.1

    z_q, idxs, loss = vector_quantize(
        z, wq_t, bq, emb, wp_t, bp,
        beta=beta, commitment_weight=commitment_weight)
    jax.block_until_ready((z_q, idxs, loss))

    # Correctness check against a float64 NumPy reference
    out_ref, idx_ref, loss_ref = _reference_f64(z, wq_t, bq, emb, wp_t, bp,
                                                beta, commitment_weight)
    np.testing.assert_array_equal(np.asarray(idxs), idx_ref)
    np.testing.assert_allclose(np.asarray(z_q), out_ref, rtol=1e-4, atol=1e-5)
    np.testing.assert_allclose(float(loss), float(loss_ref), rtol=1e-4, atol=1e-6)

    print("KERNEL_OK")
</pallas_src>

<mosaic_0001>
module attributes {stable_mosaic.version = 11 : i64} {
  func.func @_vq_kernel(%arg0: i32, %arg1: memref<32x128xf32, #tpu.memory_space<vmem>>, %arg2: memref<128x64xf32, #tpu.memory_space<vmem>>, %arg3: memref<1x64xf32, #tpu.memory_space<vmem>>, %arg4: memref<64x1024xf32, #tpu.memory_space<vmem>>, %arg5: memref<1x1024xf32, #tpu.memory_space<vmem>>, %arg6: memref<1024x128xf32, #tpu.memory_space<vmem>>, %arg7: memref<32x128xf32, #tpu.memory_space<vmem>>, %arg8: memref<32x4xi32, #tpu.memory_space<vmem>>, %arg9: memref<1x1x128xf32, #tpu.memory_space<vmem>>) attributes {dimension_semantics = [#tpu.dimension_semantics<parallel>], iteration_bounds = array<i64: 2>, scalar_prefetch = 0 : i64, scratch_operands = 0 : i64, tpu.core_type = #tpu.core_type<tc>, window_params = [{transform_indices = @transform_0, window_bounds = array<i64: 32, 128>}, {pipeline_mode = #tpu.pipeline_mode<synchronous>, transform_indices = @transform_1, window_bounds = array<i64: 128, 64>}, {pipeline_mode = #tpu.pipeline_mode<synchronous>, transform_indices = @transform_2, window_bounds = array<i64: 1, 64>}, {pipeline_mode = #tpu.pipeline_mode<synchronous>, transform_indices = @transform_3, window_bounds = array<i64: 64, 1024>}, {pipeline_mode = #tpu.pipeline_mode<synchronous>, transform_indices = @transform_4, window_bounds = array<i64: 1, 1024>}, {pipeline_mode = #tpu.pipeline_mode<synchronous>, transform_indices = @transform_5, window_bounds = array<i64: 1024, 128>}, {transform_indices = @transform_6, window_bounds = array<i64: 32, 128>}, {transform_indices = @transform_7, window_bounds = array<i64: 32, 4>}, {transform_indices = @transform_8, window_bounds = array<i64: 1, 1, 128>}]} {
    %c0 = arith.constant 0 : index
    %c0_0 = arith.constant 0 : index
    %0 = vector.load %arg1[%c0, %c0_0] : memref<32x128xf32, #tpu.memory_space<vmem>>, vector<32x128xf32>
    %c0_1 = arith.constant 0 : index
    %c0_2 = arith.constant 0 : index
    %1 = vector.load %arg2[%c0_1, %c0_2] : memref<128x64xf32, #tpu.memory_space<vmem>>, vector<128x64xf32>
    %cst = arith.constant dense<0.000000e+00> : vector<32x64xf32>
    %2 = tpu.matmul %0, %1, %cst {dimension_numbers = #tpu.dot_dimension_numbers<[1], [0], [0], [1], [0, 0, 1, 1], [], []>} : vector<32x128xf32>, vector<128x64xf32>, vector<32x64xf32> -> vector<32x64xf32>
    %c0_3 = arith.constant 0 : index
    %c0_4 = arith.constant 0 : index
    %3 = vector.load %arg3[%c0_3, %c0_4] : memref<1x64xf32, #tpu.memory_space<vmem>>, vector<1x64xf32>
    %4 = vector.broadcast %3 : vector<1x64xf32> to vector<32x64xf32>
    %5 = arith.addf %2, %4 : vector<32x64xf32>
    %c0_5 = arith.constant 0 : index
    %c0_6 = arith.constant 0 : index
    %6 = vector.load %arg4[%c0_5, %c0_6] : memref<64x1024xf32, #tpu.memory_space<vmem>>, vector<64x1024xf32>
    %cst_7 = arith.constant dense<0.000000e+00> : vector<32x1024xf32>
    %7 = tpu.matmul %5, %6, %cst_7 {dimension_numbers = #tpu.dot_dimension_numbers<[1], [0], [0], [1], [0, 0, 1, 1], [], []>} : vector<32x64xf32>, vector<64x1024xf32>, vector<32x1024xf32> -> vector<32x1024xf32>
    %c0_8 = arith.constant 0 : index
    %c0_9 = arith.constant 0 : index
    %8 = vector.load %arg5[%c0_8, %c0_9] : memref<1x1024xf32, #tpu.memory_space<vmem>>, vector<1x1024xf32>
    %cst_10 = arith.constant 2.000000e+00 : f32
    %9 = vector.broadcast %cst_10 : f32 to vector<32x1024xf32>
    %10 = arith.mulf %9, %7 : vector<32x1024xf32>
    %11 = vector.broadcast %8 : vector<1x1024xf32> to vector<32x1024xf32>
    %12 = arith.subf %11, %10 : vector<32x1024xf32>
    %13 = tpu.iota {dimensions = array<i32: 1>} : vector<32x256xi32>
    %14 = tpu.iota {dimensions = array<i32: 1>} : vector<1x4xi32>
    %c0_i32 = arith.constant 0 : i32
    %15 = vector.broadcast %c0_i32 : i32 to vector<32x4xi32>
    %cst_11 = arith.constant 0.000000e+00 : f32
    %16 = vector.broadcast %cst_11 : f32 to vector<32x1xf32>
    %17 = vector.extract_strided_slice %12 {offsets = [0, 0], sizes = [32, 256], strides = [1, 1]} : vector<32x1024xf32> to vector<32x256xf32>
    %cst_12 = arith.constant dense<0x7F800000> : vector<32xf32>
    %18 = vector.multi_reduction <minimumf>, %17, %cst_12 [1] : vector<32x256xf32> to vector<32xf32>
    %19 = vector.shape_cast %18 : vector<32xf32> to vector<32x1xf32>
    %20 = vector.broadcast %19 : vector<32x1xf32> to vector<32x256xf32>
    %21 = arith.cmpf oeq, %17, %20 : vector<32x256xf32>
    %c256_i32 = arith.constant 256 : i32
    %22 = vector.broadcast %c256_i32 : i32 to vector<32x256xi32>
    %23 = arith.select %21, %13, %22 : vector<32x256xi1>, vector<32x256xi32>
    %cst_13 = arith.constant dense<2147483647> : vector<32xi32>
    %24 = vector.multi_reduction <minsi>, %23, %cst_13 [1] : vector<32x256xi32> to vector<32xi32>
    %25 = vector.shape_cast %24 : vector<32xi32> to vector<32x1xi32>
    %26 = vector.broadcast %25 : vector<32x1xi32> to vector<32x256xi32>
    %27 = arith.cmpi eq, %13, %26 : vector<32x256xi32>
    %28 = arith.extui %27 : vector<32x256xi1> to vector<32x256xi32>
    %29 = arith.sitofp %28 : vector<32x256xi32> to vector<32x256xf32>
    %c0_i32_14 = arith.constant 0 : i32
    %30 = vector.broadcast %c0_i32_14 : i32 to vector<1x4xi32>
    %31 = arith.cmpi eq, %14, %30 : vector<1x4xi32>
    %32 = vector.shape_cast %31 : vector<1x4xi1> to vector<1x4xi1>
    %33 = vector.broadcast %32 : vector<1x4xi1> to vector<32x4xi1>
    %34 = vector.shape_cast %25 : vector<32x1xi32> to vector<32x1xi32>
    %35 = vector.broadcast %34 : vector<32x1xi32> to vector<32x4xi32>
    %36 = arith.select %33, %35, %15 : vector<32x4xi1>, vector<32x4xi32>
    %37 = arith.addf %16, %19 : vector<32x1xf32>
    %38 = vector.extract_strided_slice %12 {offsets = [0, 256], sizes = [32, 256], strides = [1, 1]} : vector<32x1024xf32> to vector<32x256xf32>
    %cst_15 = arith.constant dense<0x7F800000> : vector<32xf32>
    %39 = vector.multi_reduction <minimumf>, %38, %cst_15 [1] : vector<32x256xf32> to vector<32xf32>
    %40 = vector.shape_cast %39 : vector<32xf32> to vector<32x1xf32>
    %41 = vector.broadcast %40 : vector<32x1xf32> to vector<32x256xf32>
    %42 = arith.cmpf oeq, %38, %41 : vector<32x256xf32>
    %c256_i32_16 = arith.constant 256 : i32
    %43 = vector.broadcast %c256_i32_16 : i32 to vector<32x256xi32>
    %44 = arith.select %42, %13, %43 : vector<32x256xi1>, vector<32x256xi32>
    %cst_17 = arith.constant dense<2147483647> : vector<32xi32>
    %45 = vector.multi_reduction <minsi>, %44, %cst_17 [1] : vector<32x256xi32> to vector<32xi32>
    %46 = vector.shape_cast %45 : vector<32xi32> to vector<32x1xi32>
    %47 = vector.broadcast %46 : vector<32x1xi32> to vector<32x256xi32>
    %48 = arith.cmpi eq, %13, %47 : vector<32x256xi32>
    %49 = arith.extui %48 : vector<32x256xi1> to vector<32x256xi32>
    %50 = arith.sitofp %49 : vector<32x256xi32> to vector<32x256xf32>
    %c1_i32 = arith.constant 1 : i32
    %51 = vector.broadcast %c1_i32 : i32 to vector<1x4xi32>
    %52 = arith.cmpi eq, %14, %51 : vector<1x4xi32>
    %53 = vector.shape_cast %52 : vector<1x4xi1> to vector<1x4xi1>
    %54 = vector.broadcast %53 : vector<1x4xi1> to vector<32x4xi1>
    %55 = vector.shape_cast %46 : vector<32x1xi32> to vector<32x1xi32>
    %56 = vector.broadcast %55 : vector<32x1xi32> to vector<32x4xi32>
    %57 = arith.select %54, %56, %36 : vector<32x4xi1>, vector<32x4xi32>
    %58 = arith.addf %37, %40 : vector<32x1xf32>
    %59 = vector.extract_strided_slice %12 {offsets = [0, 512], sizes = [32, 256], strides = [1, 1]} : vector<32x1024xf32> to vector<32x256xf32>
    %cst_18 = arith.constant dense<0x7F800000> : vector<32xf32>
    %60 = vector.multi_reduction <minimumf>, %59, %cst_18 [1] : vector<32x256xf32> to vector<32xf32>
    %61 = vector.shape_cast %60 : vector<32xf32> to vector<32x1xf32>
    %62 = vector.broadcast %61 : vector<32x1xf32> to vector<32x256xf32>
    %63 = arith.cmpf oeq, %59, %62 : vector<32x256xf32>
    %c256_i32_19 = arith.constant 256 : i32
    %64 = vector.broadcast %c256_i32_19 : i32 to vector<32x256xi32>
    %65 = arith.select %63, %13, %64 : vector<32x256xi1>, vector<32x256xi32>
    %cst_20 = arith.constant dense<2147483647> : vector<32xi32>
    %66 = vector.multi_reduction <minsi>, %65, %cst_20 [1] : vector<32x256xi32> to vector<32xi32>
    %67 = vector.shape_cast %66 : vector<32xi32> to vector<32x1xi32>
    %68 = vector.broadcast %67 : vector<32x1xi32> to vector<32x256xi32>
    %69 = arith.cmpi eq, %13, %68 : vector<32x256xi32>
    %70 = arith.extui %69 : vector<32x256xi1> to vector<32x256xi32>
    %71 = arith.sitofp %70 : vector<32x256xi32> to vector<32x256xf32>
    %c2_i32 = arith.constant 2 : i32
    %72 = vector.broadcast %c2_i32 : i32 to vector<1x4xi32>
    %73 = arith.cmpi eq, %14, %72 : vector<1x4xi32>
    %74 = vector.shape_cast %73 : vector<1x4xi1> to vector<1x4xi1>
    %75 = vector.broadcast %74 : vector<1x4xi1> to vector<32x4xi1>
    %76 = vector.shape_cast %67 : vector<32x1xi32> to vector<32x1xi32>
    %77 = vector.broadcast %76 : vector<32x1xi32> to vector<32x4xi32>
    %78 = arith.select %75, %77, %57 : vector<32x4xi1>, vector<32x4xi32>
    %79 = arith.addf %58, %61 : vector<32x1xf32>
    %80 = vector.extract_strided_slice %12 {offsets = [0, 768], sizes = [32, 256], strides = [1, 1]} : vector<32x1024xf32> to vector<32x256xf32>
    %cst_21 = arith.constant dense<0x7F800000> : vector<32xf32>
    %81 = vector.multi_reduction <minimumf>, %80, %cst_21 [1] : vector<32x256xf32> to vector<32xf32>
    %82 = vector.shape_cast %81 : vector<32xf32> to vector<32x1xf32>
    %83 = vector.broadcast %82 : vector<32x1xf32> to vector<32x256xf32>
    %84 = arith.cmpf oeq, %80, %83 : vector<32x256xf32>
    %c256_i32_22 = arith.constant 256 : i32
    %85 = vector.broadcast %c256_i32_22 : i32 to vector<32x256xi32>
    %86 = arith.select %84, %13, %85 : vector<32x256xi1>, vector<32x256xi32>
    %cst_23 = arith.constant dense<2147483647> : vector<32xi32>
    %87 = vector.multi_reduction <minsi>, %86, %cst_23 [1] : vector<32x256xi32> to vector<32xi32>
    %88 = vector.shape_cast %87 : vector<32xi32> to vector<32x1xi32>
    %89 = vector.broadcast %88 : vector<32x1xi32> to vector<32x256xi32>
    %90 = arith.cmpi eq, %13, %89 : vector<32x256xi32>
    %91 = arith.extui %90 : vector<32x256xi1> to vector<32x256xi32>
    %92 = arith.sitofp %91 : vector<32x256xi32> to vector<32x256xf32>
    %c3_i32 = arith.constant 3 : i32
    %93 = vector.broadcast %c3_i32 : i32 to vector<1x4xi32>
    %94 = arith.cmpi eq, %14, %93 : vector<1x4xi32>
    %95 = vector.shape_cast %94 : vector<1x4xi1> to vector<1x4xi1>
    %96 = vector.broadcast %95 : vector<1x4xi1> to vector<32x4xi1>
    %97 = vector.shape_cast %88 : vector<32x1xi32> to vector<32x1xi32>
    %98 = vector.broadcast %97 : vector<32x1xi32> to vector<32x4xi32>
    %99 = arith.select %96, %98, %78 : vector<32x4xi1>, vector<32x4xi32>
    %100 = arith.addf %79, %82 : vector<32x1xf32>
    %101 = tpu.concatenate %29, %50, %71, %92 in 1 : vector<32x256xf32>, vector<32x256xf32>, vector<32x256xf32>, vector<32x256xf32> -> vector<32x1024xf32>
    %c0_24 = arith.constant 0 : index
    %c0_25 = arith.constant 0 : index
    %102 = vector.load %arg6[%c0_24, %c0_25] : memref<1024x128xf32, #tpu.memory_space<vmem>>, vector<1024x128xf32>
    %cst_26 = arith.constant dense<0.000000e+00> : vector<32x128xf32>
    %103 = tpu.matmul %101, %102, %cst_26 {dimension_numbers = #tpu.dot_dimension_numbers<[1], [0], [0], [1], [0, 0, 1, 1], [], []>} : vector<32x1024xf32>, vector<1024x128xf32>, vector<32x128xf32> -> vector<32x128xf32>
    %c0_27 = arith.constant 0 : index
    %c0_28 = arith.constant 0 : index
    %104 = vector.load %arg7[%c0_27, %c0_28] : memref<32x128xf32, #tpu.memory_space<vmem>>, vector<32x128xf32>
    tpu.vector_store %arg7[%c0_27, %c0_28], %103 {strides = array<i32>} : memref<32x128xf32, #tpu.memory_space<vmem>>, vector<32x128xf32>,
    %c0_29 = arith.constant 0 : index
    %c0_30 = arith.constant 0 : index
    %105 = vector.load %arg8[%c0_29, %c0_30] : memref<32x4xi32, #tpu.memory_space<vmem>>, vector<32x4xi32>
    tpu.vector_store %arg8[%c0_29, %c0_30], %99 {strides = array<i32>} : memref<32x4xi32, #tpu.memory_space<vmem>>, vector<32x4xi32>,
    %106 = arith.mulf %5, %5 : vector<32x64xf32>
    %107 = vector.shape_cast %106 : vector<32x64xf32> to vector<1x32x64xf32>
    %cst_31 = arith.constant dense<0.000000e+00> : vector<1xf32>
    %108 = vector.multi_reduction <add>, %107, %cst_31 [1, 2] : vector<1x32x64xf32> to vector<1xf32>
    %109 = vector.shape_cast %108 : vector<1xf32> to vector<1x1x1xf32>
    %110 = vector.extract %109[0, 0, 0] : f32 from vector<1x1x1xf32>
    %111 = vector.broadcast %110 : f32 to vector<1x1xf32>
    %112 = vector.shape_cast %100 : vector<32x1xf32> to vector<1x32x1xf32>
    %cst_32 = arith.constant dense<0.000000e+00> : vector<1xf32>
    %113 = vector.multi_reduction <add>, %112, %cst_32 [1, 2] : vector<1x32x1xf32> to vector<1xf32>
    %114 = vector.shape_cast %113 : vector<1xf32> to vector<1x1x1xf32>
    %115 = vector.extract %114[0, 0, 0] : f32 from vector<1x1x1xf32>
    %116 = vector.broadcast %115 : f32 to vector<1x1xf32>
    %117 = arith.addf %111, %116 : vector<1x1xf32>
    %118 = vector.shape_cast %117 : vector<1x1xf32> to vector<1x1x1xf32>
    %119 = vector.broadcast %118 : vector<1x1x1xf32> to vector<1x1x128xf32>
    %c0_33 = arith.constant 0 : index
    %c0_34 = arith.constant 0 : index
    %c0_35 = arith.constant 0 : index
    %120 = vector.load %arg9[%c0_33, %c0_34, %c0_35] : memref<1x1x128xf32, #tpu.memory_space<vmem>>, vector<1x1x128xf32>
    tpu.vector_store %arg9[%c0_33, %c0_34, %c0_35], %119 {strides = array<i32>} : memref<1x1x128xf32, #tpu.memory_space<vmem>>, vector<1x1x128xf32>,
    return
  }
  func.func @transform_0(%arg0: i32) -> (i32, i32) {
    %c0_i32 = arith.constant 0 : i32
    %c0_i32_0 = arith.constant 0 : i32
    return %arg0, %c0_i32 : i32, i32
  }
  func.func @transform_1(%arg0: i32) -> (i32, i32) {
    %c0_i32 = arith.constant 0 : i32
    %c0_i32_0 = arith.constant 0 : i32
    %c0_i32_1 = arith.constant 0 : i32
    return %c0_i32, %c0_i32_0 : i32, i32
  }
  func.func @transform_2(%arg0: i32) -> (i32, i32) {
    %c0_i32 = arith.constant 0 : i32
    %c0_i32_0 = arith.constant 0 : i32
    %c0_i32_1 = arith.constant 0 : i32
    return %c0_i32, %c0_i32_0 : i32, i32
  }
  func.func @transform_3(%arg0: i32) -> (i32, i32) {
    %c0_i32 = arith.constant 0 : i32
    %c0_i32_0 = arith.constant 0 : i32
    %c0_i32_1 = arith.constant 0 : i32
    return %c0_i32, %c0_i32_0 : i32, i32
  }
  func.func @transform_4(%arg0: i32) -> (i32, i32) {
    %c0_i32 = arith.constant 0 : i32
    %c0_i32_0 = arith.constant 0 : i32
    %c0_i32_1 = arith.constant 0 : i32
    return %c0_i32, %c0_i32_0 : i32, i32
  }
  func.func @transform_5(%arg0: i32) -> (i32, i32) {
    %c0_i32 = arith.constant 0 : i32
    %c0_i32_0 = arith.constant 0 : i32
    %c0_i32_1 = arith.constant 0 : i32
    return %c0_i32, %c0_i32_0 : i32, i32
  }
  func.func @transform_6(%arg0: i32) -> (i32, i32) {
    %c0_i32 = arith.constant 0 : i32
    %c0_i32_0 = arith.constant 0 : i32
    return %arg0, %c0_i32 : i32, i32
  }
  func.func @transform_7(%arg0: i32) -> (i32, i32) {
    %c0_i32 = arith.constant 0 : i32
    %c0_i32_0 = arith.constant 0 : i32
    return %arg0, %c0_i32 : i32, i32
  }
  func.func @transform_8(%arg0: i32) -> (i32, i32, i32) {
    %c0_i32 = arith.constant 0 : i32
    %c0_i32_0 = arith.constant 0 : i32
    %c0_i32_1 = arith.constant 0 : i32
    return %arg0, %c0_i32, %c0_i32_0 : i32, i32, i32
  }
}

</mosaic_0001>

<bundles_post_ra>
// kernel: tpu_custom_call.1
= control target key start
LH: loop header
LB: loop body
LE: loop exit
PB: predicated region body
PF: predicated region fallthrough
CT: control target
= control target key end

     0   :  { %s3716_s0 = inlined_call_operand.vmem [shape: f32[64,128], index: 0, kind: input, shape index: {}]   ;;  %s3717_s1 = inlined_call_operand.vmem [shape: f32[128,64], index: 1, kind: input, shape index: {}]   ;;  %s3718_s2 = inlined_call_operand.vmem [shape: f32[1,64], index: 2, kind: input, shape index: {}]   ;;  %s3719_s3 = inlined_call_operand.hbm [shape: f32[64,1024], index: 3, kind: input, shape index: {}]   ;;  %s3720_s4 = inlined_call_operand.vmem [shape: f32[1,1024], index: 4, kind: input, shape index: {}]   ;;  %s3721_s5 = inlined_call_operand.hbm [shape: f32[1024,128], index: 5, kind: input, shape index: {}]   ;;  %s3722_s6 = inlined_call_operand.hbm [shape: f32[64,128], index: 6, kind: output, shape index: {0}]   ;;  %s3723_s7 = inlined_call_operand.vmem [shape: s32[64,4], index: 7, kind: output, shape index: {1}]   ;;  %s3724_s8 = inlined_call_operand.hbm [shape: f32[2,1,128], index: 8, kind: output, shape index: {2}]  }
   0x1   :  { %3726 = sst [smem:[#allocation14_spill]] %s3716_s0 }
   0x2   :  { %14 = vsyncpa [#allocation3], 0 }
   0x3   :  { %15 = vsyncpa [#allocation6], 0 }
   0x4   :  { %16 = vsyncpa [#allocation4], 0 }
   0x5   :  { %18 = vsyncpa [#allocation4 + $0x1], 0 }
   0x6   :  { %19 = vsyncpa [#allocation9], 0 }
   0x7   :  { %21 = vsyncpa [#allocation9 + $0x1], 0  ;;  %s2838_s27 = smov 0   ;;  %s2840_s28 = smov 0  }
   0x8   :  { %s2842_s29 = smov 0   ;;  %s2844_s30 = smov 0  }
   0x9 LB: > { %s2859_s9 = sadd.s32 4294967295, %s2779_s30   ;;  %s2217_s10 = sadd.s32 4294967294, %s2779_s30   ;;  %s2779_s30 = sphi %s2844_s30, %s3740_s30   ;;  %s2775_s29 = sphi %s2842_s29, %s3739_s29   ;;  %s2771_s28 = sphi %s2840_s28, %s3738_s28   ;;  %s2767_s27 = sphi %s2838_s27, %s3737_s27  }
   0xa   : > { %s2863_s11 = sadd.s32 1, %s2779_s30   ;;  %s165_s12 = sadd.s32 1, %s2775_s29 }
   0xb   : > { %s162_s13 = ssub.s32 %s2779_s30, %s2863_s11  ;;  %p175_p0 = scmp.ne.s32.totalorder %s2775_s29, %s2771_s28 }
   0xc   : > { %p163_p1 = scmp.eq.s32.totalorder %s162_s13, 0  ;;  %p176_p2 = scmp.eq.s32.totalorder %s2859_s9, 1 }
   0xd   : > { %p181_p3 = scmp.ne.s32.totalorder %s2771_s28, %s2767_s27  ;;  %p182_p4 = scmp.eq.s32.totalorder %s2217_s10, 1 }
   0xe   : > { %s2874_s14 = scalar_select %p163_p1, %s2775_s29, %s165_s12  }
   0xf   : > { %p2876_p5 = por %p176_p2, %p175_p0  ;;  %p2880_p6 = por %p182_p4, %p181_p3 }
  0x10   : > { %p2218_p7 = scmp.ge.s32.totalorder %s2779_s30, 1  ;;  %p241_p8 = scmp.lt.s32.totalorder %s2779_s30, 3 }
  0x11   : > { %s3728_s16 = scalar_select %p2880_p6, 1, 0 }
  0x12   : > { %p3725_p9 = scmp.eq.s32.totalorder %s2859_s9, 0  ;;  %p2887_p10 = pnand %p2218_p7, %p241_p8 }
  0x13   : > { %s2781_s18 = smov [#allocation2]   ;;  %s2782_s21 = smov [#allocation5]  }
  0x14   : > { %s259_s19 = sshll.u32 %s2781_s18, 4  ;;  %p2568_p11 = pneg %p2887_p10  ;;  %s260_s19 = int_to_ptr.vmem [resolvable:$true] %s259_s19 }
  0x15   : > { %s275_s22 = sshll.u32 %s2782_s21, 4  ;;  %s2640_s23 = scalar_lea.vmem %s260_s19, 8192  ;;  %s276_s22 = int_to_ptr.vmem [resolvable:$true] %s275_s22 }
  0x16   : > { %p2895_p12 = pnand %p3725_p9, %p2568_p11  ;;  %p2641_p0 = scmp.ne.s32.totalorder %s260_s19, %s2640_s23 }
  0x17   : > { %p2648_p3 = scmp.lt.s32.totalorder %s260_s19, %s260_s19  ;;  %p2649_p4 = scmp.lt.s32.totalorder %s2640_s23, %s2640_s23 }
  0x18   : > { %p2631_p13 = pneg %p2895_p12 }
  0x19   : > { %p2650_p7 = por %p2649_p4, %p2648_p3 }
  0x1a   : > { %p2643_p1 = pnand %p2641_p0, %p2631_p13 }
  0x1c   : > { %p2644_p2 = pneg %p2643_p1 }
  0x1e   : > { %p2651_p8 = pnand %p2650_p7, %p2644_p2 }
  0x20   : > { %2654 = shalt.err (!%p2651_p8)
}
  0x21   : > { %s2783_s24 = smov 1024   ;;  %s2784_s25 = smov 64  }
  0x22   : > { %2571 = dma.hbm_to_vmem [thread:$0]  (!%p2895_p12), %s3719_s3, 8192, %s260_s19, [#allocation3], %s2783_s24, %s2783_s24, %s2784_s25  }
  0x23   : > { %s2666_s12 = scalar_lea.vmem %s276_s22, 16384  ;;  %p2674_p9 = scmp.lt.s32.totalorder %s276_s22, %s276_s22 }
  0x24   : > { %p2667_p11 = scmp.ne.s32.totalorder %s276_s22, %s2666_s12  ;;  %p2675_p6 = scmp.lt.s32.totalorder %s2666_s12, %s2666_s12 }
  0x26   : > { %p2669_p0 = pnand %p2667_p11, %p2631_p13  ;;  %p2676_p3 = por %p2675_p6, %p2674_p9 }
  0x28   : > { %p2670_p1 = pneg %p2669_p0 }
  0x2a   : > { %p2677_p2 = pnand %p2676_p3, %p2670_p1 }
  0x2c   : > { %2680 = shalt.err (!%p2677_p2)
}
  0x2d   : > { %s2785_s13 = smov 128   ;;  %s2786_s18 = smov 8  }
  0x2e   : > { %2574 = dma.hbm_to_vmem [thread:$0]  (!%p2895_p12), %s3721_s5, 16384, %s276_s22, [#allocation6], %s2785_s13, %s2785_s13, %s2786_s18  }
  0x2f   : > { %300 = sbr.rel (%p2887_p10) target bundleno = 1199 (0x4af), region = 44  ;;  %p3731_p4 = scmp.eq.s32.totalorder (!%p2887_p10), %s2859_s9, 0 }
  0x34   : > { %2750 = dma.done.wait (%p3731_p4), [#allocation3], 8192   ;;  %p3732_p13 = pmov %p3731_p4 }
  0x35   : > { %p3733_p6 = pmov %p3731_p4 }
  0x36   : > { %2752 = vsyncadd (%p3732_p13), [#allocation3], 4294959104 }
  0x37   : > { %2754 = dma.done.wait (%p3733_p6), [#allocation6], 16384   ;;  %p3734_p9 = pmov %p3731_p4 }
  0x38   : > { %s2226_s19 = sshll.u32 %s2859_s9, 2  ;;  %v379_v0 = vld [vmem:[%s3717_s1 + $0x78] sm:$0xff]  ;;  %v378_v1 = vld [vmem:[%s3717_s1 + $0x70] sm:$0xff]  ;;  %v377_v2 = vld [vmem:[%s3717_s1 + $0x68] sm:$0xff]  ;;  %s3735_s0 = sld [smem:[#allocation14_spill]]  ;;  %v2787_v52 = vmov 0.0  }
  0x39   : > { %2756 = vsyncadd (%p3734_p9), [#allocation6], 4294950912  ;;  %p348_p7 = scmp.lt.s32.totalorder %s2226_s19, 7  ;;  %2514 = vmatprep.subr.mxu0 %v379_v0  ;;  %v376_v3 = vld [vmem:[%s3717_s1 + $0x60] sm:$0xff]  ;;  %v375_v5 = vld [vmem:[%s3717_s1 + $0x58] sm:$0xff]  ;;  %613 = vmatprep.mubr.f32.mxu1 %v2787_v52  ;;  %vm536_vm0 = vcmask 523264  }
  0x3a   : > { %2515 = vmatpush3.msra.mxu0 %v379_v0  ;;  %v529_v6 = vld [vmem:[#allocation2 + $0x1c8] sm:$0xff]  ;;  %v528_v7 = vld [vmem:[#allocation2 + $0x1c0] sm:$0xff]  ;;  %v374_v9 = vld [vmem:[%s3717_s1 + $0x50] sm:$0xff]  ;;  %s2314_s24 = sshll.u32 %s2859_s9, 4  ;;  %s2789_s21 = smov [#allocation8]  }
  0x3b   : > { %s3742_s19 = smov (!%p348_p7, %s2226_s19), 7  ;;  %2516 = vmatprep.subr.mxu0 %v378_v1  ;;  %565 = vmatprep.subr.mxu1 %v529_v6  ;;  %v521_v8 = vld [vmem:[#allocation2 + $0x188] sm:$0xff]  ;;  %v520_v10 = vld [vmem:[#allocation2 + $0x180] sm:$0xff]  ;;  %v371_v19 = vld [vmem:[%s3717_s1 + $0x38] sm:$0xff]  ;;  %s2081_s26 = scalar_lea.hbm %s3724_s8, %s2314_s24 }
  0x3c   : > { %s2227_s17 = sshll.u32 %s3742_s19, 3  ;;  %2517 = vmatpush3.msra.mxu0 %v378_v1  ;;  %566 = vmatpush1.msra.mxu1 %v528_v7  ;;  %v513_v11 = vld [vmem:[#allocation2 + $0x148] sm:$0xff]  ;;  %v512_v12 = vld [vmem:[#allocation2 + $0x140] sm:$0xff]  ;;  %v370_v22 = vld [vmem:[%s3717_s1 + $0x30] sm:$0xff] }
  0x3d   : > { %2518 = vmatprep.subr.mxu0 %v377_v2  ;;  %567 = vmatprep.subr.mxu1 %v521_v8  ;;  %v373_v13 = vld [vmem:[%s3717_s1 + $0x48] sm:$0xff]  ;;  %v504_v15 = vld [vmem:[#allocation2 + $0x100] sm:$0xff]  ;;  %v367_v25 = vld [vmem:[%s3717_s1 + $0x18] sm:$0xff]  ;;  %s3562_s23 = scalar_lea.vmem %s3723_s7, %s2227_s17 }
  0x3e   : > { %s2945_s18 = scalar_lea.vmem %s3735_s0, %s2227_s17  ;;  %2519 = vmatpush3.msra.mxu0 %v377_v2  ;;  %568 = vmatpush1.msra.mxu1 %v520_v10  ;;  %v505_v14 = vld [vmem:[#allocation2 + $0x108] sm:$0xff]  ;;  %v372_v16 = vld [vmem:[%s3717_s1 + $0x40] sm:$0xff]  ;;  %v366_v26 = vld [vmem:[%s3717_s1 + $0x10] sm:$0xff]  ;;  %s3647_s17 = sand.u32 1, %s2771_s28  }
  0x3f   : > { %v360_v4 = vld [vmem:[%s2945_s18] sm:$0xff]  ;;  %2520 = vmatprep.subr.mxu0 %v376_v3  ;;  %569 = vmatprep.subr.mxu1 %v513_v11  ;;  %v497_v17 = vld [vmem:[#allocation2 + $0xc8] sm:$0xff]  ;;  %v362_v31 = vld [vmem:[%s2945_s18 + $0x10] sm:$0xff]  ;;  %s346_s22 = scalar_lea.vmem [#allocation8], %s3647_s17  ;;  %s2051_s12 = scalar_lea.sflag [#allocation9], %s3647_s17 }
  0x40   : > { %2546 = vmatprep.mubr.f32.mxu0 %v360_v4  ;;  %2521 = vmatpush3.msra.mxu0 %v376_v3  ;;  %v496_v18 = vld [vmem:[#allocation2 + $0xc0] sm:$0xff]  ;;  %v489_v20 = vld [vmem:[#allocation2 + $0x88] sm:$0xff]  ;;  %v363_v35 = vld [vmem:[%s2945_s18 + $0x18] sm:$0xff]  ;;  %s2083_s10 = sshll.u32 %s346_s22, 4  ;;  %s2084_s10 = int_to_ptr.vmem [resolvable:$true] %s2083_s10 }
  0x41   : > { %2522 = vmatprep.subr.mxu0 %v375_v5  ;;  %570 = vmatpush1.msra.mxu1 %v512_v12  ;;  %v488_v21 = vld [vmem:[#allocation2 + $0x80] sm:$0xff]  ;;  %v369_v23 = vld [vmem:[%s3717_s1 + $0x28] sm:$0xff]  ;;  %v531_v53 = vld [vmem:[#allocation2 + $0x1d8] sm:$0xff]  ;;  %s2681_s13 = scalar_lea.vmem %s2084_s10, 16 }
  0x42   : > { %2523 = vmatpush3.msra.mxu0 %v375_v5  ;;  %571 = vmatprep.subr.mxu1 %v505_v14  ;;  %v368_v24 = vld [vmem:[%s3717_s1 + $0x20] sm:$0xff]  ;;  %v365_v27 = vld [vmem:[%s3717_s1 + $0x8] sm:$0xff]  ;;  %v530_v59 = vld [vmem:[#allocation2 + $0x1d0] sm:$0xff]  ;;  %p2682_p10 = scmp.ne.s32.totalorder %s2084_s10, %s2681_s13 }
  0x43   : > { %2524 = vmatprep.subr.mxu0 %v374_v9  ;;  %572 = vmatpush1.msra.mxu1 %v504_v15  ;;  %v364_v28 = vld [vmem:[%s3717_s1] sm:$0xff]  ;;  %v361_v29 = vld [vmem:[%s2945_s18 + $0x8] sm:$0xff]  ;;  %v523_v62 = vld [vmem:[#allocation2 + $0x198] sm:$0xff] }
  0x44   : > { %2525 = vmatpush3.msra.mxu0 %v374_v9  ;;  %573 = vmatprep.subr.mxu1 %v497_v17  ;;  %v533_v30 = vld [vmem:[#allocation2 + $0x1e8] sm:$0xff]  ;;  %v532_v32 = vld [vmem:[#allocation2 + $0x1e0] sm:$0xff]  ;;  %v522_v0 = vld [vmem:[#allocation2 + $0x190] sm:$0xff]  ;;  %p2683_p12 = pnand %p2682_p10, %p2876_p5 }
  0x45   : > { %2526 = vmatprep.subr.mxu0 %v373_v13  ;;  %574 = vmatpush1.msra.mxu1 %v496_v18  ;;  %v525_v33 = vld [vmem:[#allocation2 + $0x1a8] sm:$0xff]  ;;  %v524_v34 = vld [vmem:[#allocation2 + $0x1a0] sm:$0xff]  ;;  %v515_v4 = vld [vmem:[#allocation2 + $0x158] sm:$0xff] }
  0x46   : > { %2527 = vmatpush3.msra.mxu0 %v373_v13  ;;  %575 = vmatprep.subr.mxu1 %v489_v20  ;;  %v517_v36 = vld [vmem:[#allocation2 + $0x168] sm:$0xff]  ;;  %v516_v37 = vld [vmem:[#allocation2 + $0x160] sm:$0xff]  ;;  %v514_v6 = vld [vmem:[#allocation2 + $0x150] sm:$0xff]  ;;  %p2684_p8 = pneg %p2683_p12 }
  0x47   : > { %2528 = vmatprep.subr.mxu0 %v372_v16  ;;  %576 = vmatpush1.msra.mxu1 %v488_v21  ;;  %v509_v38 = vld [vmem:[#allocation2 + $0x128] sm:$0xff]  ;;  %v508_v39 = vld [vmem:[#allocation2 + $0x120] sm:$0xff]  ;;  %v507_v9 = vld [vmem:[#allocation2 + $0x118] sm:$0xff] }
  0x48   : > { %2529 = vmatpush3.msra.mxu0 %v372_v16  ;;  %v501_v40 = vld [vmem:[#allocation2 + $0xe8] sm:$0xff]  ;;  %v500_v41 = vld [vmem:[#allocation2 + $0xe0] sm:$0xff]  ;;  %v506_v11 = vld [vmem:[#allocation2 + $0x110] sm:$0xff] }
  0x49   : > { %2530 = vmatprep.subr.mxu0 %v371_v19  ;;  %v493_v42 = vld [vmem:[#allocation2 + $0xa8] sm:$0xff]  ;;  %v492_v43 = vld [vmem:[#allocation2 + $0xa0] sm:$0xff]  ;;  %v499_v14 = vld [vmem:[#allocation2 + $0xd8] sm:$0xff] }
  0x4a   : > { %2531 = vmatpush3.msra.mxu0 %v371_v19  ;;  %v481_v44 = vld [vmem:[#allocation2 + $0x48] sm:$0xff]  ;;  %v480_v46 = vld [vmem:[#allocation2 + $0x40] sm:$0xff]  ;;  %v498_v15 = vld [vmem:[#allocation2 + $0xd0] sm:$0xff] }
  0x4b   : > { %2532 = vmatprep.subr.mxu0 %v370_v22  ;;  %v485_v45 = vld [vmem:[#allocation2 + $0x68] sm:$0xff]  ;;  %577 = vmatprep.subr.mxu1 %v481_v44  ;;  %v484_v47 = vld [vmem:[#allocation2 + $0x60] sm:$0xff]  ;;  %v491_v17 = vld [vmem:[#allocation2 + $0x98] sm:$0xff] }
  0x4c   : > { %2533 = vmatpush3.msra.mxu0 %v370_v22  ;;  %578 = vmatpush1.msra.mxu1 %v480_v46  ;;  %v473_v48 = vld [vmem:[#allocation2 + $0x8] sm:$0xff]  ;;  %v472_v50 = vld [vmem:[#allocation2] sm:$0xff]  ;;  %v490_v19 = vld [vmem:[#allocation2 + $0x90] sm:$0xff] }
  0x4d   : > { %2534 = vmatprep.subr.mxu0 %v369_v23  ;;  %v477_v49 = vld [vmem:[#allocation2 + $0x28] sm:$0xff]  ;;  %579 = vmatprep.subr.mxu1 %v473_v48  ;;  %v476_v51 = vld [vmem:[#allocation2 + $0x20] sm:$0xff]  ;;  %v483_v20 = vld [vmem:[#allocation2 + $0x58] sm:$0xff] }
  0x4e   : > { %2535 = vmatpush3.msra.mxu0 %v369_v23  ;;  %580 = vmatpush1.msra.mxu1 %v472_v50  ;;  %v2230_v54 = vld [vmem:[%s3718_s2] ss:$0 sm:$0xff]  ;;  %v482_v22 = vld [vmem:[#allocation2 + $0x50] sm:$0xff]  ;;  %v475_v23 = vld [vmem:[#allocation2 + $0x18] sm:$0xff] }
  0x4f   : > { %2536 = vmatprep.subr.mxu0 %v368_v24  ;;  %654 = vmatprep.subr.mxu1 %v531_v53 }
  0x50   : > { %2537 = vmatpush3.msra.mxu0 %v368_v24  ;;  %v474_v24 = vld [vmem:[#allocation2 + $0x10] sm:$0xff] }
  0x51   : > { %2538 = vmatprep.subr.mxu0 %v367_v25 }
  0x52   : > { %2539 = vmatpush3.msra.mxu0 %v367_v25  ;;  %v535_v25 = vld [vmem:[#allocation2 + $0x1f8] sm:$0xff] }
  0x53   : > { %2540 = vmatprep.subr.mxu0 %v366_v26 }
  0x54   : > { %2541 = vmatpush3.msra.mxu0 %v366_v26  ;;  %v534_v26 = vld [vmem:[#allocation2 + $0x1f0] sm:$0xff] }
  0x55   : > { %2542 = vmatprep.subr.mxu0 %v365_v27 }
  0x56   : > { %2543 = vmatpush3.msra.mxu0 %v365_v27  ;;  %v527_v27 = vld [vmem:[#allocation2 + $0x1b8] sm:$0xff] }
  0x57   : > { %2544 = vmatprep.subr.mxu0 %v364_v28 }
  0x58   : > { %2545 = vmatpush3.msra.mxu0 %v364_v28  ;;  %v526_v28 = vld [vmem:[#allocation2 + $0x1b0] sm:$0xff] }
  0x59   : > { %2547 = vmatmul.mubr.f32.vlgmr.msra.gmra.mxu0 %v361_v29  ;;  %743 = vmatprep.subr.mxu0 %v533_v30  ;;  %v519_v29 = vld [vmem:[#allocation2 + $0x178] sm:$0xff]  ;;  %v518_v30 = vld [vmem:[#allocation2 + $0x170] sm:$0xff] }
  0x5a   : > { %2549 = vmatprep.mubr.f32.mxu0 %v362_v31  ;;  %744 = vmatpush1.msra.mxu0 %v532_v32  ;;  %v511_v31 = vld [vmem:[#allocation2 + $0x138] sm:$0xff]  ;;  %v510_v32 = vld [vmem:[#allocation2 + $0x130] sm:$0xff] }
  0x5b   : > { %745 = vmatprep.subr.mxu0 %v525_v33  ;;  %v503_v33 = vld [vmem:[#allocation2 + $0xf8] sm:$0xff] }
  0x5c   : > { %746 = vmatpush1.msra.mxu0 %v524_v34  ;;  %v502_v34 = vld [vmem:[#allocation2 + $0xf0] sm:$0xff] }
  0x5d   : > { %2550 = vmatmul.mubr.f32.gmra.mxu0 %v363_v35  ;;  %747 = vmatprep.subr.mxu0 %v517_v36  ;;  %v495_v35 = vld [vmem:[#allocation2 + $0xb8] sm:$0xff]  ;;  %v494_v36 = vld [vmem:[#allocation2 + $0xb0] sm:$0xff] }
  0x5e   : > { %748 = vmatpush1.msra.mxu0 %v516_v37  ;;  %791 = vmatprep.mubr.f32.mxu0 %v2787_v52  ;;  %v487_v37 = vld [vmem:[#allocation2 + $0x78] sm:$0xff] }
  0x5f   : > { %749 = vmatprep.subr.mxu0 %v509_v38  ;;  %v486_v38 = vld [vmem:[#allocation2 + $0x70] sm:$0xff] }
  0x60   : > { %750 = vmatpush1.msra.mxu0 %v508_v39  ;;  %v479_v39 = vld [vmem:[#allocation2 + $0x38] sm:$0xff] }
  0x61   : > { %751 = vmatprep.subr.mxu0 %v501_v40  ;;  %v478_v40 = vld [vmem:[#allocation2 + $0x30] sm:$0xff] }
  0x62   : > { %752 = vmatpush1.msra.mxu0 %v500_v41  ;;  %v939_v41 = vlaneseq }
  0x63   : > { %753 = vmatprep.subr.mxu0 %v493_v42 }
  0x64   : > { %754 = vmatpush1.msra.mxu0 %v492_v43  ;;  %v3064_v42 = vshrl.u32 %v939_v41, 7 }
  0x65   : > { %755 = vmatprep.subr.mxu0 %v485_v45  ;;  %v3071_v45 = vld [vmem:[%s3720_s4] sm:$0xff] }
  0x66   : > { %756 = vmatpush1.msra.mxu0 %v484_v47  ;;  %v941_v43 = vsub.s32 0, %v3064_v42  ;;  %v945_v44 = vsub.s32 1, %v3064_v42 }
  0x67   : > { %757 = vmatprep.subr.mxu0 %v477_v49 }
  0x68   : > { %758 = vmatpush1.msra.mxu0 %v476_v51  ;;  %v3074_v48 = vrot.slane %v3071_v45, %v941_v43  ;;  %v946_v49 = vrot.slane %v3071_v45, %v945_v44 }
 0x119   : > { %v2548_v55 = vpop.f32.mrf.mxu0 }
 0x11a   : > { %v2995_v56 = vadd.f32 %v2548_v55, %v2230_v54 }
 0x11b   : > { %v453_v57 = vpop.f32.mrf.mxu0 }
 0x11c   : > { %v2997_v58 = vadd.f32 %v2230_v54, %v453_v57  ;;  %v2000_v60 = vmul.f32 %v2995_v56, %v2995_v56 }
 0x11d   : > { %v2551_v61 = vpop.f32.mrf.mxu0 }
 0x11e   : > { %v3001_v63 = vadd.f32 %v2551_v61, %v2230_v54  ;;  %2231 = vmatmul.mubr.msk.f32.vlgmr.msra.gmra.mxu1 %vm536_vm0, %v2997_v58  ;;  %2239 = vmatmul.mubr.msk.f32.vlgmr.msra.gmra.mxu0 %vm536_vm0, %v2997_v58  ;;  %v1999_v1 = vmul.f32 %v2997_v58, %v2997_v58  ;;  %v2004_v2 = vsel %vm536_vm0, %v2000_v60, 0.0 }
 0x11f   : > { %655 = vmatpush1.msra.mxu1 %v530_v59  ;;  %v463_v3 = vpop.f32.mrf.mxu0  ;;  %619 = vmatprep.mubr.f32.mxu1 %v2787_v52 }
 0x120   : > { %v3011_v5 = vadd.f32 %v2230_v54, %v463_v3  ;;  %656 = vmatprep.subr.mxu1 %v523_v62  ;;  %797 = vmatprep.mubr.f32.mxu0 %v2787_v52  ;;  %v2002_v7 = vmul.f32 %v3001_v63, %v3001_v63  ;;  %v2003_v8 = vsel %vm536_vm0, %v1999_v1, 0.0  ;;  %v949_v3 = vsub.s32 2, %v3064_v42 }
 0x121   : > { %657 = vmatpush1.msra.mxu1 %v522_v0  ;;  %v2005_v10 = vadd.f32 %v2004_v2, %v2003_v8 }
 0x122   : > { %658 = vmatprep.subr.mxu1 %v515_v4  ;;  %2232 = vmatmul.mubr.msk.f32.gmra.mxu1 %vm536_vm0, %v2995_v56  ;;  %v2001_v12 = vmul.f32 %v3011_v5, %v3011_v5  ;;  %v2008_v13 = vsel %vm536_vm0, %v2002_v7, 0.0  ;;  %v953_v4 = vsub.s32 3, %v3064_v42 }
 0x123   : > { %659 = vmatpush1.msra.mxu1 %v514_v6  ;;  %2240 = vmatmul.mubr.msk.f32.gmra.mxu0 %vm536_vm0, %v2995_v56 }
 0x124   : > { %660 = vmatprep.subr.mxu1 %v507_v9  ;;  %625 = vmatprep.mubr.f32.mxu1 %v2787_v52  ;;  %v2006_v16 = vsel %vm536_vm0, %v2001_v12, 0.0  ;;  %v950_v9 = vrot.slane %v3071_v45, %v949_v3 }
 0x125   : > { %661 = vmatpush1.msra.mxu1 %v506_v11  ;;  %803 = vmatprep.mubr.f32.mxu0 %v2787_v52  ;;  %v2007_v18 = vadd.f32 %v2006_v16, %v2005_v10  ;;  %v954_v10 = vrot.slane %v3071_v45, %v953_v4 }
 0x126   : > { %662 = vmatprep.subr.mxu1 %v499_v14  ;;  %2233 = vmatmul.mubr.msk.f32.gmra.mxu1 %vm536_vm0, %v3011_v5 }
 0x127   : > { %663 = vmatpush1.msra.mxu1 %v498_v15  ;;  %2241 = vmatmul.mubr.msk.f32.gmra.mxu0 %vm536_vm0, %v3011_v5  ;;  %v3031_v21 = vadd.f32 %v2008_v13, %v2007_v18 }
 0x128   : > { %664 = vmatprep.subr.mxu1 %v491_v17  ;;  %631 = vmatprep.mubr.f32.mxu1 %v2787_v52 }
 0x129   : > { %665 = vmatpush1.msra.mxu1 %v490_v19  ;;  %809 = vmatprep.mubr.f32.mxu0 %v2787_v52 }
 0x12a   : > { %666 = vmatprep.subr.mxu1 %v483_v20  ;;  %2234 = vmatmul.mubr.msk.f32.gmra.mxu1 %vm536_vm0, %v3001_v63  ;;  %v961_v20 = vsub.s32 5, %v3064_v42 }
 0x12b   : > { %667 = vmatpush1.msra.mxu1 %v482_v22  ;;  %2242 = vmatmul.mubr.msk.f32.gmra.mxu0 %vm536_vm0, %v3001_v63 }
 0x12c   : > { %668 = vmatprep.subr.mxu1 %v475_v23  ;;  %702 = vmatprep.mubr.f32.mxu1 %v2787_v52 }
 0x12d   : > { %669 = vmatpush1.msra.mxu1 %v474_v24 }
 0x12e   : > { %2235 = vmatmul.mubr.msk.f32.vlgmr.msra.gmra.mxu1 %vm536_vm0, %v2997_v58  ;;  %832 = vmatprep.subr.mxu1 %v535_v25 }
 0x12f   : > { %833 = vmatpush1.msra.mxu1 %v534_v26  ;;  %708 = vmatprep.mubr.f32.mxu1 %v2787_v52 }
 0x130   : > { %834 = vmatprep.subr.mxu1 %v527_v27  ;;  %v957_v27 = vsub.s32 4, %v3064_v42 }
 0x131   : > { %835 = vmatpush1.msra.mxu1 %v526_v28 }
 0x132   : > { %2236 = vmatmul.mubr.msk.f32.gmra.mxu1 %vm536_vm0, %v2995_v56  ;;  %836 = vmatprep.subr.mxu1 %v519_v29 }
 0x133   : > { %837 = vmatpush1.msra.mxu1 %v518_v30  ;;  %714 = vmatprep.mubr.f32.mxu1 %v2787_v52 }
 0x134   : > { %838 = vmatprep.subr.mxu1 %v511_v31 }
 0x135   : > { %839 = vmatpush1.msra.mxu1 %v510_v32 }
 0x136   : > { %2237 = vmatmul.mubr.msk.f32.gmra.mxu1 %vm536_vm0, %v3011_v5  ;;  %840 = vmatprep.subr.mxu1 %v503_v33 }
 0x137   : > { %841 = vmatpush1.msra.mxu1 %v502_v34  ;;  %720 = vmatprep.mubr.f32.mxu1 %v2787_v52 }
 0x138   : > { %842 = vmatprep.subr.mxu1 %v495_v35 }
 0x139   : > { %843 = vmatpush1.msra.mxu1 %v494_v36  ;;  %v3113_v36 = vrot.slane %v3071_v45, %v961_v20 }
 0x13a   : > { %2238 = vmatmul.mubr.msk.f32.gmra.mxu1 %vm536_vm0, %v3001_v63  ;;  %844 = vmatprep.subr.mxu1 %v487_v37 }
 0x13b   : > { %845 = vmatpush1.msra.mxu1 %v486_v38  ;;  %880 = vmatprep.mubr.f32.mxu1 %v2787_v52 }
 0x13c   : > { %846 = vmatprep.subr.mxu1 %v479_v39 }
 0x13d   : > { %847 = vmatpush1.msra.mxu1 %v478_v40 }
 0x13e   : > { %2243 = vmatmul.mubr.msk.f32.vlgmr.msra.gmra.mxu1 %vm536_vm0, %v2997_v58 }
 0x13f   : > { %886 = vmatprep.mubr.f32.mxu1 %v2787_v52 }
 0x142   : > { %2244 = vmatmul.mubr.msk.f32.gmra.mxu1 %vm536_vm0, %v2995_v56 }
 0x143   : > { %892 = vmatprep.mubr.f32.mxu1 %v2787_v52 }
 0x146   : > { %2245 = vmatmul.mubr.msk.f32.gmra.mxu1 %vm536_vm0, %v3011_v5 }
 0x147   : > { %898 = vmatprep.mubr.f32.mxu1 %v2787_v52 }
 0x14a   : > { %2246 = vmatmul.mubr.msk.f32.gmra.mxu1 %vm536_vm0, %v3001_v63 }
 0x1de   : > { %v615_v46 = vpop.f32.mrf.mxu1  ;;  %v793_v59 = vpop.f32.mrf.mxu0 }
 0x1df   : > { %v906_v47 = vmul.f32 2.0, %v615_v46  ;;  %v910_v44 = vmul.f32 2.0, %v793_v59  ;;  %v3122_v46 = vrot.slane %v3071_v45, %v957_v27 }
 0x1e0   : > { %v617_v50 = vpop.f32.mrf.mxu1  ;;  %v795_v1 = vpop.f32.mrf.mxu0 }
 0x1e1   : > { %v907_v51 = vmul.f32 2.0, %v617_v50  ;;  %v3078_v54 = vsub.f32 %v3074_v48, %v906_v47  ;;  %v911_v35 = vmul.f32 2.0, %v795_v1 }
 0x1e2   : > { %v621_v52 = vpop.f32.mrf.mxu1 }
 0x1e3   : > { %v914_v53 = vmul.f32 2.0, %v621_v52  ;;  %v3080_v55 = vsub.f32 %v946_v49, %v907_v51  ;;  %v799_v6 = vpop.f32.mrf.mxu0  ;;  %v965_v51 = vsub.s32 6, %v3064_v42  ;;  %v969_v52 = vsub.s32 7, %v3064_v42 }
 0x1e4   : > { %v623_v56 = vpop.f32.mrf.mxu1 }
 0x1e5   : > { %v915_v57 = vmul.f32 2.0, %v623_v56  ;;  %v1014_v58 = vmin.f32 %v3078_v54, %v3080_v55  ;;  %v3085_v61 = vsub.f32 %v3074_v48, %v914_v53  ;;  %v801_v14 = vpop.f32.mrf.mxu0  ;;  %v966_v3 = vrot.slane %v3071_v45, %v965_v51 }
 0x1e6   : > { %v627_v60 = vpop.f32.mrf.mxu1  ;;  %v970_v4 = vrot.slane %v3071_v45, %v969_v52 }
 0x1e7   : > { %1015 = vmin.xlane.f32.xlu0 %v1014_v58  ;;  %v3087_v62 = vsub.f32 %v946_v49, %v915_v57  ;;  %v922_v15 = vmul.f32 2.0, %v627_v60  ;;  %v805_v29 = vpop.f32.mrf.mxu0  ;;  %v919_v58 = vmul.f32 2.0, %v801_v14  ;;  %v3134_v60 = vsub.f32 %v3113_v36, %v911_v35 }
 0x1e8   : > { %v629_v63 = vpop.f32.mrf.mxu1 }
 0x1e9   : > { %v1017_v0 = vmin.f32 %v3085_v61, %v3087_v62  ;;  %v923_v12 = vmul.f32 2.0, %v629_v63  ;;  %v3106_v28 = vsub.f32 %v3074_v48, %v922_v15  ;;  %v807_v47 = vpop.f32.mrf.mxu0 }
 0x1ea   : > { %v633_v2 = vpop.f32.mrf.mxu1 }
 0x1eb   : > { %1018 = vmin.xlane.f32.xlu1 %v1017_v0  ;;  %v3100_v23 = vsub.f32 %v946_v49, %v923_v12  ;;  %v930_v31 = vmul.f32 2.0, %v633_v2  ;;  %v811_v1 = vpop.f32.mrf.mxu0  ;;  %v3150_v12 = vsub.f32 %v3113_v36, %v919_v58 }
 0x1ec   : > { %v635_v5 = vpop.f32.mrf.mxu1 }
 0x1ed   : > { %v931_v24 = vmul.f32 2.0, %v635_v5  ;;  %v1020_v40 = vmin.f32 %v3106_v28, %v3100_v23  ;;  %v3143_v5 = vsub.f32 %v3122_v46, %v910_v44 }
 0x1ee   : > { %v704_v7 = vpop.f32.mrf.mxu1 }
 0x1ef   : > { %v908_v8 = vmul.f32 2.0, %v704_v7  ;;  %v3115_v38 = vsub.f32 %v946_v49, %v931_v24  ;;  %v3127_v49 = vsub.f32 %v3074_v48, %v930_v31  ;;  %v918_v48 = vmul.f32 2.0, %v799_v6 }
 0x1f0   : > { %v706_v11 = vpop.f32.mrf.mxu1  ;;  %v1268_v15 = vmin.f32 %v3143_v5, %v3134_v60 }
 0x1f1   : > { %v909_v13 = vmul.f32 2.0, %v706_v11  ;;  %v3095_v17 = vsub.f32 %v950_v9, %v908_v8  ;;  %v1023_v0 = vmin.f32 %v3127_v49, %v3115_v38 }
 0x1f2   : > { %v710_v16 = vpop.f32.mrf.mxu1 }
 0x1f3   : > { %v3097_v18 = vsub.f32 %v954_v10, %v909_v13  ;;  %v916_v19 = vmul.f32 2.0, %v710_v16  ;;  %v927_v13 = vmul.f32 2.0, %v807_v47  ;;  %v813_v16 = vpop.f32.mrf.mxu0 }
 0x1f4   : > { %v712_v22 = vpop.f32.mrf.mxu1 }
 0x1f5   : > { %v917_v25 = vmul.f32 2.0, %v712_v22  ;;  %v1141_v26 = vmin.f32 %v3095_v17, %v3097_v18  ;;  %v3108_v32 = vsub.f32 %v950_v9, %v916_v19  ;;  %v3166_v27 = vsub.f32 %v3113_v36, %v927_v13 }
 0x1f6   : > { %v716_v30 = vpop.f32.mrf.mxu1 }
 0x1f7   : > { %v3110_v33 = vsub.f32 %v954_v10, %v917_v25  ;;  %v924_v34 = vmul.f32 2.0, %v716_v30  ;;  %1142 = vmin.xlane.f32.xlu0 %v1141_v26  ;;  %v935_v30 = vmul.f32 2.0, %v813_v16 }
 0x1f8   : > { %v718_v37 = vpop.f32.mrf.mxu1 }
 0x1f9   : > { %v925_v39 = vmul.f32 2.0, %v718_v37  ;;  %v1144_v43 = vmin.f32 %v3108_v32, %v3110_v33  ;;  %v3129_v53 = vsub.f32 %v950_v9, %v924_v34  ;;  %v934_v37 = vmul.f32 2.0, %v811_v1 }
 0x1fa   : > { %v722_v50 = vpop.f32.mrf.mxu1  ;;  %v3178_v47 = vsub.f32 %v3113_v36, %v935_v30 }
 0x1fb   : > { %v3131_v56 = vsub.f32 %v954_v10, %v925_v39  ;;  %v932_v57 = vmul.f32 2.0, %v722_v50  ;;  %1021 = vmin.xlane.f32.xlu0 %v1020_v40  ;;  %1145 = vmin.xlane.f32.xlu1 %v1144_v43  ;;  %v3185_v58 = vsub.f32 %v3122_v46, %v934_v37 }
 0x1fc   : > { %v724_v59 = vpop.f32.mrf.mxu1 }
 0x1fd   : > { %v933_v63 = vmul.f32 2.0, %v724_v59  ;;  %v1147_v42 = vmin.f32 %v3129_v53, %v3131_v56  ;;  %v3145_v7 = vsub.f32 %v950_v9, %v932_v57  ;;  %v3157_v9 = vsub.f32 %v3122_v46, %v918_v48 }
 0x1fe   : > { %v882_v2 = vpop.f32.mrf.mxu1  ;;  %v1277_v48 = vmin.f32 %v3185_v58, %v3178_v47 }
 0x1ff   : > { %v3147_v8 = vsub.f32 %v954_v10, %v933_v63  ;;  %v912_v11 = vmul.f32 2.0, %v882_v2  ;;  %1024 = vmin.xlane.f32.xlu0 %v1023_v0  ;;  %1148 = vmin.xlane.f32.xlu1 %v1147_v42  ;;  %v926_v10 = vmul.f32 2.0, %v805_v29  ;;  %v1271_v26 = vmin.f32 %v3157_v9, %v3150_v12 }
 0x200   : > { %v884_v6 = vpop.f32.mrf.mxu1 }
 0x201   : > { %v913_v14 = vmul.f32 2.0, %v884_v6  ;;  %v1150_v45 = vmin.f32 %v3145_v7, %v3147_v8  ;;  %v3159_v20 = vsub.f32 %v966_v3, %v912_v11  ;;  %v3171_v34 = vsub.f32 %v3122_v46, %v926_v10 }
 0x202   : > { %v888_v19 = vpop.f32.mrf.mxu1  ;;  %v3202_v6 = vand.u32 127, %v939_v41 }
 0x203   : > { %v3161_v22 = vsub.f32 %v970_v4, %v913_v14  ;;  %v920_v24 = vmul.f32 2.0, %v888_v19  ;;  %1269 = vmin.xlane.f32.xlu0 %v1268_v15  ;;  %1151 = vmin.xlane.f32.xlu1 %v1150_v45  ;;  %v1274_v51 = vmin.f32 %v3171_v34, %v3166_v27 }
 0x204   : > { %v890_v25 = vpop.f32.mrf.mxu1  ;;  %v3205_v13 = vadd.s32 128, %v3202_v6 }
 0x205   : > { %v921_v31 = vmul.f32 2.0, %v890_v25  ;;  %v1395_v29 = vmin.f32 %v3159_v20, %v3161_v22  ;;  %v3173_v39 = vsub.f32 %v966_v3, %v920_v24 }
 0x206   : > { %v894_v35 = vpop.f32.mrf.mxu1 }
 0x207   : > { %v3175_v40 = vsub.f32 %v970_v4, %v921_v31  ;;  %v928_v43 = vmul.f32 2.0, %v894_v35  ;;  %1272 = vmin.xlane.f32.xlu0 %v1271_v26  ;;  %1396 = vmin.xlane.f32.xlu1 %v1395_v29 }
 0x208   : > { %v896_v44 = vpop.f32.mrf.mxu1 }
 0x209   : > { %v929_v50 = vmul.f32 2.0, %v896_v44  ;;  %v1398_v52 = vmin.f32 %v3173_v39, %v3175_v40  ;;  %v3187_v59 = vsub.f32 %v966_v3, %v928_v43 }
 0x20a   : > { %v900_v57 = vpop.f32.mrf.mxu1 }
 0x20b   : > { %v3189_v63 = vsub.f32 %v970_v4, %v929_v50  ;;  %v936_v0 = vmul.f32 2.0, %v900_v57  ;;  %1275 = vmin.xlane.f32.xlu0 %v1274_v51  ;;  %1399 = vmin.xlane.f32.xlu1 %v1398_v52 }
 0x20c   : > { %v902_v36 = vpop.f32.mrf.mxu1 }
 0x20d   : > { %v937_v42 = vmul.f32 2.0, %v902_v36  ;;  %v1401_v1 = vmin.f32 %v3187_v59, %v3189_v63  ;;  %v3195_v2 = vsub.f32 %v966_v3, %v936_v0 }
 0x20f   : > { %v3197_v11 = vsub.f32 %v970_v4, %v937_v42  ;;  %1278 = vmin.xlane.f32.xlu0 %v1277_v48  ;;  %1402 = vmin.xlane.f32.xlu1 %v1401_v1 }
 0x211   : > { %v1404_v46 = vmin.f32 %v3195_v2, %v3197_v11 }
 0x213   : > { %1405 = vmin.xlane.f32.xlu1 %v1404_v46 }
 0x270   : > { %v1016_v14 = vpop.xlane.xlu0 %1015 }
 0x271   : > { %vm1026_vm1 = vcmp.eq.f32.partialorder %v3078_v54, %v1016_v14  ;;  %vm1027_vm2 = vcmp.eq.f32.partialorder %v3080_v55, %v1016_v14 }
 0x272   : > { %v1034_v3 = vsel %vm1026_vm1, %v3202_v6, 256  ;;  %v1035_v4 = vsel %vm1027_vm2, %v3205_v13, 256 }
 0x273   : > { %vm1042_vm3 = vcmp.lt.s32.totalorder %v1034_v3, %v1035_v4 }
 0x274   : > { %v1019_v15 = vpop.xlane.xlu1 %1018  ;;  %v3211_v45 = vsel %vm1042_vm3, %v1034_v3, %v1035_v4 }
 0x275   : > { %vm1028_vm4 = vcmp.eq.f32.partialorder %v3085_v61, %v1019_v15  ;;  %vm1029_vm5 = vcmp.eq.f32.partialorder %v3087_v62, %v1019_v15  ;;  %v1045_v41 = vshra.s32 %v3211_v45, 16 }
 0x276   : > { %v1036_v10 = vsel %vm1028_vm4, %v3202_v6, 256  ;;  %v1037_v54 = vsel %vm1029_vm5, %v3205_v13, 256 }
 0x277   : > { %v3218_v16 = vcvt.s32.f32 %v1045_v41  ;;  %vm1058_vm6 = vcmp.lt.s32.totalorder %v1036_v10, %v1037_v54 }
 0x278   : > { %v3220_v55 = vsel %vm1058_vm6, %v1036_v10, %v1037_v54 }
 0x279   : > { %1048 = vmin.xlane.f32.xlu0 %v3218_v16  ;;  %v1061_v19 = vshra.s32 %v3220_v55, 16 }
 0x27b   : > { %v3224_v24 = vcvt.s32.f32 %v1061_v19 }
 0x27d   : > { %1064 = vmin.xlane.f32.xlu0 %v3224_v24 }
 0x280   : > { %v1143_v61 = vpop.xlane.xlu0 %1142 }
 0x281   : > { %vm1153_vm7 = vcmp.eq.f32.partialorder %v3095_v17, %v1143_v61  ;;  %vm1154_vm8 = vcmp.eq.f32.partialorder %v3097_v18, %v1143_v61  ;;  %v1264_v62 = vadd.f32 %v1143_v61, %v1016_v14 }
 0x282   : > { %v1161_v25 = vsel %vm1153_vm7, %v3202_v6, 256  ;;  %v1162_v26 = vsel %vm1154_vm8, %v3205_v13, 256 }
 0x283   : > { %vm1169_vm9 = vcmp.lt.s32.totalorder %v1161_v25, %v1162_v26 }
 0x284   : > { %v1022_v30 = vpop.xlane.xlu0 %1021  ;;  %v1146_v31 = vpop.xlane.xlu1 %1145  ;;  %v3231_v29 = vsel %vm1169_vm9, %v1161_v25, %v1162_v26 }
 0x285   : > { %vm1030_vm10 = vcmp.eq.f32.partialorder %v3106_v28, %v1022_v30  ;;  %vm1031_vm11 = vcmp.eq.f32.partialorder %v3100_v23, %v1022_v30  ;;  %vm1155_vm12 = vcmp.eq.f32.partialorder %v3108_v32, %v1146_v31  ;;  %vm1156_vm13 = vcmp.eq.f32.partialorder %v3110_v33, %v1146_v31 }
 0x286   : > { %v1038_v17 = vsel %vm1030_vm10, %v3202_v6, 256  ;;  %v1039_v18 = vsel %vm1031_vm11, %v3205_v13, 256  ;;  %v1163_v35 = vsel %vm1155_vm12, %v3202_v6, 256  ;;  %v1164_v37 = vsel %vm1156_vm13, %v3205_v13, 256 }
 0x287   : > { %v1265_v43 = vadd.f32 %v1146_v31, %v1019_v15  ;;  %v1172_v44 = vshra.s32 %v3231_v29, 16  ;;  %vm1074_vm14 = vcmp.lt.s32.totalorder %v1038_v17, %v1039_v18  ;;  %vm1185_vm15 = vcmp.lt.s32.totalorder %v1163_v35, %v1164_v37 }
 0x288   : > { %v1025_v28 = vpop.xlane.xlu0 %1024  ;;  %v1149_v50 = vpop.xlane.xlu1 %1148  ;;  %v3242_v23 = vsel %vm1074_vm14, %v1038_v17, %v1039_v18  ;;  %v3244_v32 = vsel %vm1185_vm15, %v1163_v35, %v1164_v37 }
 0x289   : > { %vm1032_vm0 = vcmp.eq.f32.partialorder %v3127_v49, %v1025_v28  ;;  %vm1033_vm1 = vcmp.eq.f32.partialorder %v3115_v38, %v1025_v28  ;;  %vm1157_vm2 = vcmp.eq.f32.partialorder %v3129_v53, %v1149_v50  ;;  %vm1158_vm3 = vcmp.eq.f32.partialorder %v3131_v56, %v1149_v50 }
 0x28a   : > { %v1040_v33 = vsel %vm1032_vm0, %v3202_v6, 256  ;;  %v1041_v51 = vsel %vm1033_vm1, %v3205_v13, 256  ;;  %v1165_v52 = vsel %vm1157_vm2, %v3202_v6, 256  ;;  %v1166_v57 = vsel %vm1158_vm3, %v3205_v13, 256 }
 0x28b   : > { %v1266_v0 = vadd.f32 %v1149_v50, %v1022_v30  ;;  %v3254_v36 = vcvt.s32.f32 %v1172_v44  ;;  %v1077_v42 = vshra.s32 %v3242_v23, 16  ;;  %v1188_v49 = vshra.s32 %v3244_v32, 16 }
 0x28c   : > { %v1270_v38 = vpop.xlane.xlu0 %1269  ;;  %v1152_v48 = vpop.xlane.xlu1 %1151  ;;  %vm1090_vm4 = vcmp.lt.s32.totalorder %v1040_v33, %v1041_v51  ;;  %vm1201_vm5 = vcmp.lt.s32.totalorder %v1165_v52, %v1166_v57 }
 0x28d   : > { %1175 = vmin.xlane.f32.xlu1 %v3254_v36  ;;  %vm1280_vm6 = vcmp.eq.f32.partialorder %v3143_v5, %v1270_v38  ;;  %vm1281_vm7 = vcmp.eq.f32.partialorder %v3134_v60, %v1270_v38  ;;  %v1391_v53 = vadd.f32 %v1270_v38, %v1264_v62  ;;  %vm1159_vm8 = vcmp.eq.f32.partialorder %v3145_v7, %v1152_v48 }
 0x28e   : > { %v1288_v56 = vsel %vm1280_vm6, %v3202_v6, 256  ;;  %v1289_v1 = vsel %vm1281_vm7, %v3205_v13, 256  ;;  %vm1160_vm9 = vcmp.eq.f32.partialorder %v3147_v8, %v1152_v48  ;;  %v1167_v46 = vsel %vm1159_vm8, %v3202_v6, 256 }
 0x28f   : > { %v1168_v14 = vsel %vm1160_vm9, %v3205_v13, 256  ;;  %v3267_v3 = vadd.f32 %v1152_v48, %v1025_v28  ;;  %v3269_v4 = vcvt.s32.f32 %v1077_v42  ;;  %v3271_v5 = vcvt.s32.f32 %v1188_v49 }
 0x290   : > { %v1273_v60 = vpop.xlane.xlu0 %1272  ;;  %v1397_v15 = vpop.xlane.xlu1 %1396  ;;  %v3274_v7 = vsel %vm1090_vm4, %v1040_v33, %v1041_v51  ;;  %v3277_v41 = vsel %vm1201_vm5, %v1165_v52, %v1166_v57  ;;  %vm1296_vm10 = vcmp.lt.s32.totalorder %v1288_v56, %v1289_v1  ;;  %vm1217_vm11 = vcmp.lt.s32.totalorder %v1167_v46, %v1168_v14 }
 0x291   : > { %1080 = vmin.xlane.f32.xlu0 %v3269_v4  ;;  %1191 = vmin.xlane.f32.xlu1 %v3271_v5  ;;  %vm1282_vm12 = vcmp.eq.f32.partialorder %v3157_v9, %v1273_v60  ;;  %vm1283_vm13 = vcmp.eq.f32.partialorder %v3150_v12, %v1273_v60  ;;  %v1392_v8 = vadd.f32 %v1273_v60, %v1265_v43  ;;  %v1093_v10 = vshra.s32 %v3274_v7, 16 }
 0x292   : > { %v1290_v54 = vsel %vm1282_vm12, %v3202_v6, 256  ;;  %v1291_v19 = vsel %vm1283_vm13, %v3205_v13, 256  ;;  %vm1407_vm14 = vcmp.eq.f32.partialorder %v3159_v20, %v1397_v15  ;;  %vm1408_vm15 = vcmp.eq.f32.partialorder %v3161_v22, %v1397_v15 }
 0x293   : > { %v3288_v61 = vadd.f32 %v1397_v15, %v1391_v53  ;;  %v3290_v62 = vcvt.s32.f32 %v1093_v10  ;;  %v1204_v25 = vshra.s32 %v3277_v41, 16  ;;  %v3294_v12 = vsel %vm1296_vm10, %v1288_v56, %v1289_v1 }
 0x294   : > { %v1276_v9 = vpop.xlane.xlu0 %1275  ;;  %v1400_v26 = vpop.xlane.xlu1 %1399  ;;  %v3297_v30 = vsel %vm1217_vm11, %v1167_v46, %v1168_v14  ;;  %vm1312_vm2 = vcmp.lt.s32.totalorder %v1290_v54, %v1291_v19  ;;  %v1415_v22 = vsel %vm1407_vm14, %v3202_v6, 256  ;;  %v1416_v31 = vsel %vm1408_vm15, %v3205_v13, 256 }
 0x295   : > { %1096 = vmin.xlane.f32.xlu0 %v3290_v62  ;;  %vm1284_vm0 = vcmp.eq.f32.partialorder %v3171_v34, %v1276_v9  ;;  %vm1285_vm1 = vcmp.eq.f32.partialorder %v3166_v27, %v1276_v9  ;;  %v1393_v20 = vadd.f32 %v1276_v9, %v1266_v0  ;;  %v3304_v17 = vcvt.s32.f32 %v1204_v25 }
 0x296   : > { %vm1409_vm3 = vcmp.eq.f32.partialorder %v3173_v39, %v1400_v26  ;;  %v1292_v18 = vsel %vm1284_vm0, %v3202_v6, 256  ;;  %vm1410_vm4 = vcmp.eq.f32.partialorder %v3175_v40, %v1400_v26  ;;  %v1519_v35 = vadd.f32 %v1400_v26, %v1392_v8 }
 0x297   : > { %v1299_v37 = vshra.s32 %v3294_v12, 16  ;;  %1207 = vmin.xlane.f32.xlu1 %v3304_v17  ;;  %v1293_v27 = vsel %vm1285_vm1, %v3205_v13, 256  ;;  %v1417_v34 = vsel %vm1409_vm3, %v3202_v6, 256  ;;  %v1220_v43 = vshra.s32 %v3297_v30, 16 }
 0x298   : > { %v1279_v44 = vpop.xlane.xlu0 %1278  ;;  %v1403_v28 = vpop.xlane.xlu1 %1402  ;;  %v3314_v50 = vsel %vm1312_vm2, %v1290_v54, %v1291_v19  ;;  %vm1423_vm7 = vcmp.lt.s32.totalorder %v1415_v22, %v1416_v31  ;;  %v1418_v40 = vsel %vm1410_vm4, %v3205_v13, 256  ;;  %vm1328_vm10 = vcmp.lt.s32.totalorder %v1292_v18, %v1293_v27 }
 0x299   : > { %v3316_v39 = vcvt.s32.f32 %v1299_v37  ;;  %vm1286_vm5 = vcmp.eq.f32.partialorder %v3185_v58, %v1279_v44  ;;  %vm1287_vm6 = vcmp.eq.f32.partialorder %v3178_v47, %v1279_v44  ;;  %v3321_v33 = vcvt.s32.f32 %v1220_v43 }
 0x29a   : > { %v1294_v51 = vsel %vm1286_vm5, %v3202_v6, 256  ;;  %v1295_v52 = vsel %vm1287_vm6, %v3205_v13, 256  ;;  %vm1411_vm8 = vcmp.eq.f32.partialorder %v3187_v59, %v1403_v28  ;;  %vm1412_vm9 = vcmp.eq.f32.partialorder %v3189_v63, %v1403_v28 }
 0x29b   : > { %1302 = vmin.xlane.f32.xlu0 %v3316_v39  ;;  %v1520_v57 = vadd.f32 %v1403_v28, %v1393_v20  ;;  %v1315_v58 = vshra.s32 %v3314_v50, 16  ;;  %1223 = vmin.xlane.f32.xlu1 %v3321_v33  ;;  %v1419_v47 = vsel %vm1411_vm8, %v3202_v6, 256  ;;  %v1420_v0 = vsel %vm1412_vm9, %v3205_v13, 256  ;;  %v1537_v28 = vld [vmem:[#allocation5 + $0x78] sm:$0xff] }
 0x29c   : > { %v3332_v42 = vsel %vm1423_vm7, %v1415_v22, %v1416_v31  ;;  %v1406_v49 = vpop.xlane.xlu1 %1405  ;;  %v3341_v53 = vsel %vm1328_vm10, %v1292_v18, %v1293_v27  ;;  %vm1439_vm13 = vcmp.lt.s32.totalorder %v1417_v34, %v1418_v40  ;;  %vm1344_vm14 = vcmp.lt.s32.totalorder %v1294_v51, %v1295_v52 }
 0x29d   : > { %v3334_v38 = vcvt.s32.f32 %v1315_v58  ;;  %v1426_v48 = vshra.s32 %v3332_v42, 16  ;;  %vm1413_vm11 = vcmp.eq.f32.partialorder %v3195_v2, %v1406_v49  ;;  %vm1414_vm12 = vcmp.eq.f32.partialorder %v3197_v11, %v1406_v49  ;;  %v1534_v58 = vld [vmem:[#allocation5 + $0x60] sm:$0xff] }
 0x29e   : > { %v1421_v59 = vsel %vm1413_vm11, %v3202_v6, 256  ;;  %v1422_v63 = vsel %vm1414_vm12, %v3205_v13, 256  ;;  %v1331_v1 = vshra.s32 %v3341_v53, 16  ;;  %v3347_v46 = vsel %vm1439_vm13, %v1417_v34, %v1418_v40  ;;  %v1536_v40 = vld [vmem:[#allocation5 + $0x70] sm:$0xff] }
 0x29f   : > { %1318 = vmin.xlane.f32.xlu0 %v3334_v38  ;;  %v3344_v56 = vcvt.s32.f32 %v1426_v48  ;;  %v3349_v14 = vsel %vm1344_vm14, %v1294_v51, %v1295_v52  ;;  %vm1455_vm15 = vcmp.lt.s32.totalorder %v1419_v47, %v1420_v0  ;;  %vm1471_vm0 = vcmp.lt.s32.totalorder %v1421_v59, %v1422_v63  ;;  %v1551_v51 = vld [vmem:[#allocation5 + $0xe8] sm:$0xff]  ;;  %v1550_v52 = vld [vmem:[#allocation5 + $0xe0] sm:$0xff]  ;;  %v1584_v48 = vld [vmem:[#allocation5 + $0x1f0] sm:$0xff] }
 0x2a0   : > { %v3352_v2 = vcvt.s32.f32 %v1331_v1  ;;  %v1442_v11 = vshra.s32 %v3347_v46, 16  ;;  %v1347_v60 = vshra.s32 %v3349_v14, 16  ;;  %v3356_v15 = vsel %vm1455_vm15, %v1419_v47, %v1420_v0  ;;  %v1549_v47 = vld [vmem:[#allocation5 + $0xd8] sm:$0xff]  ;;  %v1583_v1 = vld [vmem:[#allocation5 + $0x1e8] sm:$0xff] }
 0x2a1   : > { %1429 = vmin.xlane.f32.xlu1 %v3344_v56  ;;  %v1458_v8 = vshra.s32 %v3356_v15, 16  ;;  %v3359_v10 = vsel %vm1471_vm0, %v1421_v59, %v1422_v63  ;;  %v1394_v25 = vadd.f32 %v1279_v44, %v3267_v3  ;;  %vm2020_vm1 = vcmask 7168   ;;  %v1553_v44 = vld [vmem:[#allocation5 + $0xf8] sm:$0xff]  ;;  %v1568_v59 = vld [vmem:[#allocation5 + $0x170] sm:$0xff] }
 0x2a2   : > { %v3362_v54 = vcvt.s32.f32 %v1442_v11  ;;  %v3364_v19 = vcvt.s32.f32 %v1347_v60  ;;  %v1474_v26 = vshra.s32 %v3359_v10, 16  ;;  %v2022_v20 = vsel %vm2020_vm1, %v1519_v35, 0.0  ;;  %v1552_v35 = vld [vmem:[#allocation5 + $0xf0] sm:$0xff]  ;;  %2338 = vmatprep.subr.mxu0 %v1553_v44  ;;  %v1569_v0 = vld [vmem:[#allocation5 + $0x178] sm:$0xff]  ;;  %v1567_v60 = vld [vmem:[#allocation5 + $0x168] sm:$0xff] }
 0x2a3   : > { %1334 = vmin.xlane.f32.xlu0 %v3352_v2  ;;  %v3368_v9 = vcvt.s32.f32 %v1458_v8  ;;  %v1521_v22 = vadd.f32 %v1406_v49, %v1394_v25  ;;  %v2021_v31 = vsel %vm2020_vm1, %v3288_v61, 0.0  ;;  %v2024_v27 = vsel %vm2020_vm1, %v1520_v57, 0.0  ;;  %2339 = vmatpush3.msra.mxu0 %v1537_v28  ;;  %v1535_v61 = vld [vmem:[#allocation5 + $0x68] sm:$0xff]  ;;  %v1585_v57 = vld [vmem:[#allocation5 + $0x1f8] sm:$0xff]  ;;  %v1548_v63 = vld [vmem:[#allocation5 + $0xd0] sm:$0xff] }
 0x2a4   : > { %v3374_v18 = vcvt.s32.f32 %v1474_v26  ;;  %v2023_v37 = vadd.f32 %v2022_v20, %v2021_v31  ;;  %2340 = vmatprep.subr.mxu0 %v1552_v35  ;;  %2382 = vmatprep.subr.mxu1 %v1585_v57  ;;  %v1533_v49 = vld [vmem:[#allocation5 + $0x58] sm:$0xff]  ;;  %v1532_v11 = vld [vmem:[#allocation5 + $0x50] sm:$0xff]  ;;  %v1582_v8 = vld [vmem:[#allocation5 + $0x1e0] sm:$0xff] }
 0x2a5   : > { %1445 = vmin.xlane.f32.xlu1 %v3362_v54  ;;  %v2026_v3 = vsel %vm2020_vm1, %v1521_v22, 0.0  ;;  %2341 = vmatpush3.msra.mxu0 %v1536_v40  ;;  %v1547_v25 = vld [vmem:[#allocation5 + $0xc8] sm:$0xff]  ;;  %v1566_v26 = vld [vmem:[#allocation5 + $0x160] sm:$0xff]  ;;  %v1581_v22 = vld [vmem:[#allocation5 + $0x1d8] sm:$0xff] }
 0x2a6   : > { %v2025_v34 = vadd.f32 %v2024_v27, %v2023_v37  ;;  %2342 = vmatprep.subr.mxu0 %v1551_v51  ;;  %2383 = vmatpush3.msra.mxu1 %v1569_v0  ;;  %v1531_v20 = vld [vmem:[#allocation5 + $0x48] sm:$0xff]  ;;  %v1546_v31 = vld [vmem:[#allocation5 + $0xc0] sm:$0xff]  ;;  %v1565_v37 = vld [vmem:[#allocation5 + $0x158] sm:$0xff]  ;;  %v1044_v0 = vand.u32 65535, %v3211_v45  ;;  %v1171_v45 = vand.u32 65535, %v3231_v29 }
 0x2a7   : > { %1350 = vmin.xlane.f32.xlu0 %v3364_v19  ;;  %2343 = vmatpush3.msra.mxu0 %v1535_v61  ;;  %v1530_v27 = vld [vmem:[#allocation5 + $0x40] sm:$0xff]  ;;  %v1529_v44 = vld [vmem:[#allocation5 + $0x38] sm:$0xff]  ;;  %v1544_v28 = vld [vmem:[#allocation5 + $0xb0] sm:$0xff] }
 0x2a8   : > { %v3377_v43 = vadd.f32 %v2026_v3, %v2025_v34  ;;  %2344 = vmatprep.subr.mxu0 %v1550_v52  ;;  %2384 = vmatprep.subr.mxu1 %v1584_v48  ;;  %v1580_v3 = vld [vmem:[#allocation5 + $0x1d0] sm:$0xff]  ;;  %v1545_v34 = vld [vmem:[#allocation5 + $0xb8] sm:$0xff]  ;;  %v1543_v40 = vld [vmem:[#allocation5 + $0xa8] sm:$0xff]  ;;  %v1046_v48 = vcvt.s32.f32 %v1044_v0 }
 0x2a9   : > { %1461 = vmin.xlane.f32.xlu1 %v3368_v9  ;;  %2345 = vmatpush3.msra.mxu0 %v1534_v58  ;;  %v1528_v35 = vld [vmem:[#allocation5 + $0x30] sm:$0xff]  ;;  %v1527_v51 = vld [vmem:[#allocation5 + $0x28] sm:$0xff]  ;;  %v1542_v61 = vld [vmem:[#allocation5 + $0xa0] sm:$0xff] }
 0x2aa   : > { %2346 = vmatprep.subr.mxu0 %v1549_v47  ;;  %2385 = vmatpush3.msra.mxu1 %v1568_v59  ;;  %v1526_v52 = vld [vmem:[#allocation5 + $0x20] sm:$0xff]  ;;  %v1541_v58 = vld [vmem:[#allocation5 + $0x98] sm:$0xff]  ;;  %v1540_v47 = vld [vmem:[#allocation5 + $0x90] sm:$0xff]  ;;  %v1060_v59 = vand.u32 65535, %v3220_v55 }
 0x2ab   : > { %2347 = vmatpush3.msra.mxu0 %v1533_v49  ;;  %2386 = vmatprep.subr.mxu1 %v1583_v1  ;;  %v1525_v57 = vld [vmem:[#allocation5 + $0x18] sm:$0xff]  ;;  %v1579_v55 = vld [vmem:[#allocation5 + $0x1c8] sm:$0xff]  ;;  %v1522_v29 = vld [vmem:[#allocation5] sm:$0xff] }
 0x2ac   : > { %2348 = vmatprep.subr.mxu0 %v1548_v63  ;;  %2387 = vmatpush3.msra.mxu1 %v1567_v60 }
 0x2ad   : > { %1477 = vmin.xlane.f32.xlu1 %v3374_v18  ;;  %2349 = vmatpush3.msra.mxu0 %v1532_v11  ;;  %v1062_v11 = vcvt.s32.f32 %v1060_v59  ;;  %v1203_v59 = vand.u32 65535, %v3277_v41 }
 0x2ae   : > { %2388 = vmatprep.subr.mxu1 %v1582_v8  ;;  %2350 = vmatprep.subr.mxu0 %v1547_v25  ;;  %v1524_v8 = vld [vmem:[#allocation5 + $0x10] sm:$0xff] }
 0x2af   : > { %2389 = vmatpush3.msra.mxu1 %v1566_v26  ;;  %2351 = vmatpush3.msra.mxu0 %v1531_v20  ;;  %v1564_v25 = vld [vmem:[#allocation5 + $0x150] sm:$0xff]  ;;  %v1539_v26 = vld [vmem:[#allocation5 + $0x88] sm:$0xff]  ;;  %v1205_v41 = vcvt.s32.f32 %v1203_v59  ;;  %v1473_v59 = vand.u32 65535, %v3359_v10 }
 0x2b0   : > { %2390 = vmatprep.subr.mxu1 %v1581_v22  ;;  %2352 = vmatprep.subr.mxu0 %v1546_v31  ;;  %v1523_v20 = vld [vmem:[#allocation5 + $0x8] sm:$0xff]  ;;  %v1538_v22 = vld [vmem:[#allocation5 + $0x80] sm:$0xff] }
 0x2b1   : > { %2391 = vmatpush3.msra.mxu1 %v1565_v37  ;;  %2353 = vmatpush3.msra.mxu0 %v1530_v27  ;;  %v1578_v31 = vld [vmem:[#allocation5 + $0x1c0] sm:$0xff]  ;;  %v1173_v27 = vcvt.s32.f32 %v1171_v45  ;;  %v1298_v45 = vand.u32 65535, %v3294_v12 }
 0x2b2   : > { %2392 = vmatprep.subr.mxu1 %v1580_v3  ;;  %2354 = vmatprep.subr.mxu0 %v1545_v34  ;;  %v1187_v3 = vand.u32 65535, %v3244_v32  ;;  %v1562_v34 = vld [vmem:[#allocation5 + $0x140] sm:$0xff] }
 0x2b3   : > { %2355 = vmatpush3.msra.mxu0 %v1529_v44  ;;  %2393 = vmatpush3.msra.mxu1 %v1564_v25  ;;  %v1577_v44 = vld [vmem:[#allocation5 + $0x1b8] sm:$0xff]  ;;  %v1300_v12 = vcvt.s32.f32 %v1298_v45 }
 0x2b4   : > { %2356 = vmatprep.subr.mxu0 %v1544_v28  ;;  %2394 = vmatprep.subr.mxu1 %v1579_v55  ;;  %v1572_v55 = vld [vmem:[#allocation5 + $0x190] sm:$0xff] }
 0x2b5   : > { %2357 = vmatpush3.msra.mxu0 %v1528_v35  ;;  %v1617_v35 = vld [vmem:[#allocation5 + $0x2f8] sm:$0xff] }
 0x2b6   : > { %2358 = vmatprep.subr.mxu0 %v1543_v40  ;;  %v1561_v40 = vld [vmem:[#allocation5 + $0x138] sm:$0xff] }
 0x2b7   : > { %2359 = vmatpush3.msra.mxu0 %v1527_v51  ;;  %v1560_v51 = vld [vmem:[#allocation5 + $0x130] sm:$0xff] }
 0x2b8   : > { %2360 = vmatprep.subr.mxu0 %v1542_v61 }
 0x2b9   : > { %2361 = vmatpush3.msra.mxu0 %v1526_v52 }
 0x2ba   : > { %2362 = vmatprep.subr.mxu0 %v1541_v58  ;;  %v1092_v58 = vand.u32 65535, %v3274_v7 }
 0x2bb   : > { %2363 = vmatpush3.msra.mxu0 %v1525_v57  ;;  %v1575_v57 = vld [vmem:[#allocation5 + $0x1a8] sm:$0xff] }
 0x2bc   : > { %2364 = vmatprep.subr.mxu0 %v1540_v47 }
 0x2bd   : > { %2365 = vmatpush3.msra.mxu0 %v1524_v8  ;;  %v1557_v8 = vld [vmem:[#allocation5 + $0x118] sm:$0xff] }
 0x2be   : > { %2366 = vmatprep.subr.mxu0 %v1539_v26  ;;  %v1219_v26 = vand.u32 65535, %v3297_v30 }
 0x2bf   : > { %2367 = vmatpush3.msra.mxu0 %v1523_v20 }
 0x2c0   : > { %2368 = vmatprep.subr.mxu0 %v1538_v22  ;;  %v1221_v30 = vcvt.s32.f32 %v1219_v26 }
 0x2c1   : > { %2369 = vmatpush3.msra.mxu0 %v1522_v29 }
 0x2c2   : > { %2426 = vmatprep.subr.mxu0 %v1617_v35  ;;  %v1441_v35 = vand.u32 65535, %v3347_v46 }
 0x302   : > { %v3380_v49 = vpop.xlane.xlu0 %1048 }
 0x303   : > { %vm1050_vm2 = vcmp.eq.f32.partialorder %v3218_v16, %v3380_v49  ;;  %v1563_v16 = vld [vmem:[#allocation5 + $0x148] sm:$0xff]  ;;  %v1055_v10 = vcvt.f32.s32 %v3380_v49  ;;  %v1600_v49 = vld [vmem:[#allocation5 + $0x270] sm:$0xff] }
 0x304   : > { %v1051_v63 = vsel %vm1050_vm2, %v1046_v48, inf  ;;  %2395 = vmatpush3.msra.mxu1 %v1563_v16  ;;  %v1559_v48 = vld [vmem:[#allocation5 + $0x128] sm:$0xff]  ;;  %v1314_v16 = vand.u32 65535, %v3314_v50 }
 0x305   : > { %1052 = vmin.xlane.f32.xlu0 %v1051_v63  ;;  %2396 = vmatprep.subr.mxu1 %v1578_v31  ;;  %v1574_v63 = vld [vmem:[#allocation5 + $0x1a0] sm:$0xff] }
 0x306   : > { %v3385_v1 = vpop.xlane.xlu0 %1064  ;;  %2397 = vmatpush3.msra.mxu1 %v1562_v34  ;;  %v1316_v50 = vcvt.s32.f32 %v1314_v16  ;;  %v1330_v34 = vand.u32 65535, %v3341_v53  ;;  %v1554_v53 = vld [vmem:[#allocation5 + $0x100] sm:$0xff]  ;;  %v1613_v16 = vld [vmem:[#allocation5 + $0x2d8] sm:$0xff] }
 0x307   : > { %vm1066_vm3 = vcmp.eq.f32.partialorder %v3224_v24, %v3385_v1  ;;  %v1076_v24 = vand.u32 65535, %v3242_v23  ;;  %2398 = vmatprep.subr.mxu1 %v1577_v44  ;;  %v1576_v23 = vld [vmem:[#allocation5 + $0x1b0] sm:$0xff]  ;;  %v1555_v44 = vld [vmem:[#allocation5 + $0x108] sm:$0xff] }
 0x308   : > { %v1067_v60 = vsel %vm1066_vm3, %v1062_v11, inf  ;;  %2399 = vmatpush3.msra.mxu1 %v1561_v40  ;;  %v1094_v11 = vcvt.s32.f32 %v1092_v58  ;;  %v1443_v58 = vcvt.s32.f32 %v1441_v35 }
 0x309   : > { %1068 = vmin.xlane.f32.xlu0 %v1067_v60  ;;  %v1078_v52 = vcvt.s32.f32 %v1076_v24  ;;  %2400 = vmatprep.subr.mxu1 %v1576_v23  ;;  %v1558_v60 = vld [vmem:[#allocation5 + $0x120] sm:$0xff]  ;;  %v1556_v24 = vld [vmem:[#allocation5 + $0x110] sm:$0xff] }
 0x30a   : > { %2401 = vmatpush3.msra.mxu1 %v1560_v51  ;;  %v1332_v51 = vcvt.s32.f32 %v1330_v34  ;;  %v1594_v34 = vld [vmem:[#allocation5 + $0x240] sm:$0xff] }
 0x30b   : > { %2402 = vmatprep.subr.mxu1 %v1575_v57 }
 0x30c   : > { %2403 = vmatpush3.msra.mxu1 %v1559_v48 }
 0x30d   : > { %2404 = vmatprep.subr.mxu1 %v1574_v63  ;;  %v1475_v63 = vcvt.s32.f32 %v1473_v59  ;;  %v1591_v59 = vld [vmem:[#allocation5 + $0x228] sm:$0xff] }
 0x30e   : > { %2405 = vmatpush3.msra.mxu1 %v1558_v60  ;;  %v1056_v60 = vshll.u32 %v1055_v10, 16  ;;  %v1648_v10 = vld [vmem:[#allocation5 + $0x3f0] sm:$0xff] }
 0x316   : > { %v3390_v37 = vpop.xlane.xlu1 %1175 }
 0x317   : > { %vm1177_vm4 = vcmp.eq.f32.partialorder %v3254_v36, %v3390_v37  ;;  %v1189_v36 = vcvt.s32.f32 %v1187_v3  ;;  %v1571_v3 = vld [vmem:[#allocation5 + $0x188] sm:$0xff] }
 0x318   : > { %v1178_v28 = vsel %vm1177_vm4, %v1173_v27, inf }
 0x319   : > { %1179 = vmin.xlane.f32.xlu1 %v1178_v28 }
 0x31a   : > { %v3396_v32 = vpop.xlane.xlu0 %1080  ;;  %v3398_v61 = vpop.xlane.xlu1 %1191 }
 0x31b   : > { %vm1082_vm5 = vcmp.eq.f32.partialorder %v3269_v4, %v3396_v32  ;;  %vm1193_vm6 = vcmp.eq.f32.partialorder %v3271_v5, %v3398_v61  ;;  %v1573_v4 = vld [vmem:[#allocation5 + $0x198] sm:$0xff] }
 0x31c   : > { %v1083_v47 = vsel %vm1082_vm5, %v1078_v52, inf  ;;  %v1194_v0 = vsel %vm1193_vm6, %v1189_v36, inf  ;;  %2406 = vmatprep.subr.mxu1 %v1573_v4  ;;  %v1649_v52 = vld [vmem:[#allocation5 + $0x3f8] sm:$0xff]  ;;  %vm1130_vm6 = vcmp.eq.s32.totalorder %v3202_v6, 0 }
 0x31d   : > { %1084 = vmin.xlane.f32.xlu0 %v1083_v47  ;;  %1195 = vmin.xlane.f32.xlu1 %v1194_v0 }
 0x31e   : > { %v3406_v7 = vpop.xlane.xlu0 %1096  ;;  %2407 = vmatpush3.msra.mxu1 %v1557_v8 }
 0x31f   : > { %vm1098_vm7 = vcmp.eq.f32.partialorder %v3290_v62, %v3406_v7  ;;  %2408 = vmatprep.subr.mxu1 %v1572_v55  ;;  %v1599_v55 = vld [vmem:[#allocation5 + $0x268] sm:$0xff] }
 0x320   : > { %v1099_v5 = vsel %vm1098_vm7, %v1094_v11, inf  ;;  %v3411_v25 = vpop.xlane.xlu1 %1207  ;;  %2409 = vmatpush3.msra.mxu1 %v1556_v24  ;;  %v1182_v24 = vcvt.f32.s32 %v3390_v37  ;;  %vm1257_vm7 = vcmp.eq.s32.totalorder %v3202_v6, 1  ;;  %v1608_v37 = vld [vmem:[#allocation5 + $0x2b0] sm:$0xff] }
 0x321   : > { %1100 = vmin.xlane.f32.xlu0 %v1099_v5  ;;  %vm1209_vm8 = vcmp.eq.f32.partialorder %v3304_v17, %v3411_v25  ;;  %v1425_v17 = vand.u32 65535, %v3332_v42  ;;  %2410 = vmatprep.subr.mxu1 %v1571_v3  ;;  %v1595_v3 = vld [vmem:[#allocation5 + $0x248] sm:$0xff] }
 0x322   : > { %v1210_v62 = vsel %vm1209_vm8, %v1205_v41, inf  ;;  %2411 = vmatpush3.msra.mxu1 %v1555_v44  ;;  %v2788_v41 = vmov 1.0   ;;  %v1087_v44 = vcvt.f32.s32 %v3396_v32  ;;  %v1183_v35 = vshll.u32 %v1182_v24, 16 }
 0x323   : > { %1211 = vmin.xlane.f32.xlu1 %v1210_v62  ;;  %v1427_v28 = vcvt.s32.f32 %v1425_v17  ;;  %v1614_v62 = vld [vmem:[#allocation5 + $0x2e0] sm:$0xff]  ;;  %v1596_v17 = vld [vmem:[#allocation5 + $0x250] sm:$0xff] }
 0x324   : > { %v3416_v20 = vpop.xlane.xlu0 %1302  ;;  %v3419_v22 = vpop.xlane.xlu1 %1223 }
 0x325   : > { %vm1304_vm9 = vcmp.eq.f32.partialorder %v3316_v39, %v3416_v20  ;;  %vm1225_vm10 = vcmp.eq.f32.partialorder %v3321_v33, %v3419_v22  ;;  %v1570_v39 = vld [vmem:[#allocation5 + $0x180] sm:$0xff] }
 0x326   : > { %v1305_v31 = vsel %vm1304_vm9, %v1300_v12, inf  ;;  %v1226_v27 = vsel %vm1225_vm10, %v1221_v30, inf  ;;  %2412 = vmatprep.subr.mxu1 %v1570_v39  ;;  %v1598_v12 = vld [vmem:[#allocation5 + $0x260] sm:$0xff]  ;;  %v1597_v30 = vld [vmem:[#allocation5 + $0x258] sm:$0xff]  ;;  %v1198_v39 = vcvt.f32.s32 %v3398_v61  ;;  %v1103_v61 = vcvt.f32.s32 %v3406_v7 }
 0x327   : > { %1306 = vmin.xlane.f32.xlu0 %v1305_v31  ;;  %1227 = vmin.xlane.f32.xlu1 %v1226_v27  ;;  %v1612_v31 = vld [vmem:[#allocation5 + $0x2d0] sm:$0xff]  ;;  %v1611_v27 = vld [vmem:[#allocation5 + $0x2c8] sm:$0xff]  ;;  %v1633_v7 = vld [vmem:[#allocation5 + $0x378] sm:$0xff] }
 0x328   : > { %v3426_v29 = vpop.xlane.xlu0 %1318  ;;  %2413 = vmatpush3.msra.mxu1 %v1554_v53  ;;  %v1199_v32 = vshll.u32 %v1198_v39, 16 }
 0x329   : > { %vm1320_vm11 = vcmp.eq.f32.partialorder %v3334_v38, %v3426_v29  ;;  %v1346_v38 = vand.u32 65535, %v3349_v14  ;;  %2470 = vmatprep.subr.mxu1 %v1649_v52  ;;  %v1088_v52 = vshll.u32 %v1087_v44, 16  ;;  %v1589_v44 = vld [vmem:[#allocation5 + $0x218] sm:$0xff] }
 0x32a   : > { %v3431_v33 = vpop.xlane.xlu1 %1429  ;;  %v1321_v42 = vsel %vm1320_vm11, %v1316_v50, inf  ;;  %v1610_v50 = vld [vmem:[#allocation5 + $0x2c0] sm:$0xff] }
 0x32b   : > { %1322 = vmin.xlane.f32.xlu0 %v1321_v42  ;;  %vm1431_vm12 = vcmp.eq.f32.partialorder %v3344_v56, %v3431_v33  ;;  %v1457_v56 = vand.u32 65535, %v3356_v15  ;;  %v1348_v14 = vcvt.s32.f32 %v1346_v38  ;;  %v1592_v38 = vld [vmem:[#allocation5 + $0x230] sm:$0xff] }
 0x32c   : > { %v1432_v40 = vsel %vm1431_vm12, %v1427_v28, inf  ;;  %v3436_v23 = vpop.xlane.xlu0 %1334  ;;  %v1609_v28 = vld [vmem:[#allocation5 + $0x2b8] sm:$0xff] }
 0x32d   : > { %1433 = vmin.xlane.f32.xlu1 %v1432_v40  ;;  %vm1336_vm13 = vcmp.eq.f32.partialorder %v3352_v2, %v3436_v23  ;;  %v1459_v48 = vcvt.s32.f32 %v1457_v56  ;;  %v1593_v40 = vld [vmem:[#allocation5 + $0x238] sm:$0xff] }
 0x32e   : > { %v3441_v46 = vpop.xlane.xlu1 %1445  ;;  %v1337_v36 = vsel %vm1336_vm13, %v1332_v51, inf }
 0x32f   : > { %1338 = vmin.xlane.f32.xlu0 %v1337_v36  ;;  %vm1447_vm14 = vcmp.eq.f32.partialorder %v3362_v54, %v3441_v46 }
 0x330   : > { %v1448_v57 = vsel %vm1447_vm14, %v1443_v58, inf  ;;  %v3446_v47 = vpop.xlane.xlu0 %1350 }
 0x331   : > { %1449 = vmin.xlane.f32.xlu1 %v1448_v57  ;;  %vm1352_vm15 = vcmp.eq.f32.partialorder %v3364_v19, %v3446_v47  ;;  %v1607_v57 = vld [vmem:[#allocation5 + $0x2a8] sm:$0xff] }
 0x332   : > { %v3450_v2 = vpop.xlane.xlu1 %1461  ;;  %v1353_v0 = vsel %vm1352_vm15, %v1348_v14, inf }
 0x333   : > { %1354 = vmin.xlane.f32.xlu0 %v1353_v0  ;;  %vm1463_vm0 = vcmp.eq.f32.partialorder %v3368_v9, %v3450_v2  ;;  %v1071_v9 = vcvt.f32.s32 %v3385_v1  ;;  %v1615_v1 = vld [vmem:[#allocation5 + $0x2e8] sm:$0xff] }
 0x334   : > { %v1464_v15 = vsel %vm1463_vm0, %v1459_v48, inf  ;;  %vm1384_vm0 = vcmp.eq.s32.totalorder %v3202_v6, 2 }
 0x335   : > { %1465 = vmin.xlane.f32.xlu1 %v1464_v15  ;;  %v1072_v8 = vshll.u32 %v1071_v9, 16  ;;  %v1606_v15 = vld [vmem:[#allocation5 + $0x2a0] sm:$0xff] }
 0x336   : > { %v3455_v54 = vpop.xlane.xlu1 %1477 }
 0x337   : > { %2010 = vadd.xlane.f32.xlu0 %v3031_v21  ;;  %vm1479_vm1 = vcmp.eq.f32.partialorder %v3374_v18, %v3455_v54  ;;  %v1601_v18 = vld [vmem:[#allocation5 + $0x278] sm:$0xff] }
 0x338   : > { %v1480_v19 = vsel %vm1479_vm1, %v1475_v63, inf }
 0x339   : > { %1481 = vmin.xlane.f32.xlu1 %v1480_v19 }
 0x33d   : > { %2028 = vadd.xlane.f32.xlu1 %v3377_v43  ;;  %v1616_v43 = vld [vmem:[#allocation5 + $0x2f0] sm:$0xff] }
 0x38e   : > { %v1053_v11 = vpop.xlane.xlu0 %1052 }
 0x38f   : > { %v1054_v4 = vcvt.f32.s32 %v1053_v11  ;;  %v1214_v11 = vcvt.f32.s32 %v3411_v25  ;;  %v1647_v25 = vld [vmem:[#allocation5 + $0x3e8] sm:$0xff] }
 0x391   : > { %v1057_v5 = vadd.s32 %v1056_v60, %v1054_v4  ;;  %v1632_v4 = vld [vmem:[#allocation5 + $0x370] sm:$0xff] }
 0x392   : > { %v1069_v45 = vpop.xlane.xlu0 %1068 }
 0x393   : > { %vm1106_vm2 = vcmp.eq.s32.totalorder %v3202_v6, %v1057_v5  ;;  %v1070_v21 = vcvt.f32.s32 %v1069_v45  ;;  %vm1107_vm3 = vcmp.eq.s32.totalorder %v3205_v13, %v1057_v5  ;;  %v1133_v36 = vsel %vm1130_vm6, %v1057_v5, 0 }
 0x394   : > { %2279 = vmatprep.mubr.msk.f32.mxu0 %vm1107_vm3, %v2788_v41  ;;  %v1104_v5 = vshll.u32 %v1103_v61, 16  ;;  %v1628_v61 = vld [vmem:[#allocation5 + $0x350] sm:$0xff] }
 0x395   : > { %v3466_v26 = vadd.s32 %v1072_v8, %v1070_v21  ;;  %2280 = vmatmul.mubr.msk.f32.vlgmr.msra.gmra.mxu0 %vm1106_vm2, %v2788_v41  ;;  %v1309_v21 = vcvt.f32.s32 %v3416_v20 }
 0x396   : > { %2427 = vmatpush3.msra.mxu0 %v1601_v18  ;;  %v1590_v18 = vld [vmem:[#allocation5 + $0x220] sm:$0xff] }
 0x397   : > { %2428 = vmatprep.subr.mxu0 %v1616_v43  ;;  %vm1109_vm4 = vcmp.eq.s32.totalorder %v3205_v13, %v3466_v26  ;;  %vm1108_vm5 = vcmp.eq.s32.totalorder %v3202_v6, %v3466_v26  ;;  %v1134_v60 = vsel %vm1130_vm6, %v3466_v26, 0  ;;  %v1230_v43 = vcvt.f32.s32 %v3419_v22 }
 0x398   : > { %2429 = vmatpush3.msra.mxu0 %v1600_v49  ;;  %2281 = vmatprep.mubr.msk.f32.mxu0 %vm1109_vm4, %v2788_v41  ;;  %v1310_v22 = vshll.u32 %v1309_v21, 16  ;;  %v1468_v21 = vcvt.f32.s32 %v3450_v2  ;;  %v1625_v2 = vld [vmem:[#allocation5 + $0x338] sm:$0xff] }
 0x399   : > { %2430 = vmatprep.subr.mxu0 %v1615_v1  ;;  %2282 = vmatmul.mubr.msk.f32.gmra.mxu0 %vm1108_vm5, %v2788_v41  ;;  %v1631_v1 = vld [vmem:[#allocation5 + $0x368] sm:$0xff]  ;;  %v1231_v24 = vshll.u32 %v1230_v43, 16  ;;  %v1641_v43 = vld [vmem:[#allocation5 + $0x3b8] sm:$0xff] }
 0x39a   : > { %2431 = vmatpush3.msra.mxu0 %v1599_v55  ;;  %v1215_v55 = vshll.u32 %v1214_v11, 16 }
 0x39b   : > { %2432 = vmatprep.subr.mxu0 %v1614_v62  ;;  %v1646_v62 = vld [vmem:[#allocation5 + $0x3e0] sm:$0xff] }
 0x39c   : > { %2433 = vmatpush3.msra.mxu0 %v1598_v12  ;;  %v1605_v12 = vld [vmem:[#allocation5 + $0x298] sm:$0xff] }
 0x39d   : > { %2434 = vmatprep.subr.mxu0 %v1613_v16  ;;  %v1630_v16 = vld [vmem:[#allocation5 + $0x360] sm:$0xff] }
 0x39e   : > { %2435 = vmatpush3.msra.mxu0 %v1597_v30  ;;  %v1325_v30 = vcvt.f32.s32 %v3426_v29 }
 0x39f   : > { %2436 = vmatprep.subr.mxu0 %v1612_v31 }
 0x3a0   : > { %2437 = vmatpush3.msra.mxu0 %v1596_v17 }
 0x3a1   : > { %2438 = vmatprep.subr.mxu0 %v1611_v27  ;;  %v1645_v27 = vld [vmem:[#allocation5 + $0x3d8] sm:$0xff] }
 0x3a2   : > { %v1180_v42 = vpop.xlane.xlu1 %1179  ;;  %2439 = vmatpush3.msra.mxu0 %v1595_v3 }
 0x3a3   : > { %v1181_v53 = vcvt.f32.s32 %v1180_v42  ;;  %2440 = vmatprep.subr.mxu0 %v1610_v50  ;;  %v1629_v42 = vld [vmem:[#allocation5 + $0x358] sm:$0xff] }
 0x3a4   : > { %2441 = vmatpush3.msra.mxu0 %v1594_v34 }
 0x3a5   : > { %v1184_v51 = vadd.s32 %v1183_v35, %v1181_v53  ;;  %2442 = vmatprep.subr.mxu0 %v1609_v28  ;;  %v1604_v28 = vld [vmem:[#allocation5 + $0x290] sm:$0xff]  ;;  %v1436_v35 = vcvt.f32.s32 %v3431_v33 }
 0x3a6   : > { %v1085_v58 = vpop.xlane.xlu0 %1084  ;;  %v1196_v56 = vpop.xlane.xlu1 %1195  ;;  %2443 = vmatpush3.msra.mxu0 %v1593_v40  ;;  %v1644_v40 = vld [vmem:[#allocation5 + $0x3d0] sm:$0xff] }
 0x3a7   : > { %vm1233_vm8 = vcmp.eq.s32.totalorder %v3202_v6, %v1184_v51  ;;  %v3486_v14 = vsel %vm1257_vm7, %v1184_v51, %v1133_v36  ;;  %v1086_v0 = vcvt.f32.s32 %v1085_v58  ;;  %v1197_v48 = vcvt.f32.s32 %v1196_v56  ;;  %2444 = vmatprep.subr.mxu0 %v1608_v37  ;;  %v1588_v37 = vld [vmem:[#allocation5 + $0x210] sm:$0xff]  ;;  %v1603_v56 = vld [vmem:[#allocation5 + $0x288] sm:$0xff] }
 0x3a8   : > { %vm1234_vm9 = vcmp.eq.s32.totalorder %v3205_v13, %v1184_v51  ;;  %2445 = vmatpush3.msra.mxu0 %v1592_v38  ;;  %v1326_v51 = vshll.u32 %v1325_v30, 16  ;;  %v1341_v38 = vcvt.f32.s32 %v3436_v23  ;;  %v1452_v23 = vcvt.f32.s32 %v3441_v46  ;;  %v1587_v46 = vld [vmem:[#allocation5 + $0x208] sm:$0xff] }
 0x3a9   : > { %v1089_v63 = vadd.s32 %v1088_v52, %v1086_v0  ;;  %v1200_v19 = vadd.s32 %v1199_v32, %v1197_v48  ;;  %2287 = vmatprep.mubr.msk.f32.mxu1 %vm1234_vm9, %v2788_v41  ;;  %2446 = vmatprep.subr.mxu0 %v1607_v57  ;;  %v1643_v48 = vld [vmem:[#allocation5 + $0x3c8] sm:$0xff]  ;;  %v1484_v30 = vcvt.f32.s32 %v3455_v54 }
 0x3aa   : > { %2288 = vmatmul.mubr.msk.f32.vlgmr.msra.gmra.mxu1 %vm1233_vm8, %v2788_v41  ;;  %v1101_v9 = vpop.xlane.xlu0 %1100  ;;  %2447 = vmatpush3.msra.mxu0 %v1591_v59  ;;  %v1623_v54 = vld [vmem:[#allocation5 + $0x328] sm:$0xff] }
 0x3ab   : > { %v3499_v45 = vsel %vm1257_vm7, %v1200_v19, %v1134_v60  ;;  %2471 = vmatpush3.msra.mxu1 %v1633_v7  ;;  %v1102_v8 = vcvt.f32.s32 %v1101_v9  ;;  %vm1111_vm10 = vcmp.eq.s32.totalorder %v3205_v13, %v1089_v63  ;;  %2448 = vmatprep.subr.mxu0 %v1606_v15  ;;  %vm1236_vm11 = vcmp.eq.s32.totalorder %v3205_v13, %v1200_v19  ;;  %v1627_v15 = vld [vmem:[#allocation5 + $0x348] sm:$0xff]  ;;  %v1642_v60 = vld [vmem:[#allocation5 + $0x3c0] sm:$0xff] }
 0x3ac   : > { %2472 = vmatprep.subr.mxu1 %v1648_v10  ;;  %2283 = vmatprep.mubr.msk.f32.mxu0 %vm1111_vm10, %v2788_v41  ;;  %vm1110_vm12 = vcmp.eq.s32.totalorder %v3202_v6, %v1089_v63  ;;  %vm1235_vm13 = vcmp.eq.s32.totalorder %v3202_v6, %v1200_v19  ;;  %v1212_v49 = vpop.xlane.xlu1 %1211  ;;  %v1135_v3 = vsel %vm1130_vm6, %v1089_v63, 0  ;;  %v1342_v63 = vshll.u32 %v1341_v38, 16  ;;  %v1602_v10 = vld [vmem:[#allocation5 + $0x280] sm:$0xff]  ;;  %v1621_v38 = vld [vmem:[#allocation5 + $0x318] sm:$0xff] }
 0x3ad   : > { %v1105_v26 = vadd.s32 %v1104_v5, %v1102_v8  ;;  %2473 = vmatpush3.msra.mxu1 %v1632_v4  ;;  %2289 = vmatprep.mubr.msk.f32.mxu1 %vm1236_vm11, %v2788_v41  ;;  %v1213_v20 = vcvt.f32.s32 %v1212_v49  ;;  %v1357_v19 = vcvt.f32.s32 %v3446_v47  ;;  %v1586_v5 = vld [vmem:[#allocation5 + $0x200] sm:$0xff] }
 0x3ae   : > { %2474 = vmatprep.subr.mxu1 %v1647_v25  ;;  %2284 = vmatmul.mubr.msk.f32.gmra.mxu0 %vm1110_vm12, %v2788_v41  ;;  %v1626_v8 = vld [vmem:[#allocation5 + $0x340] sm:$0xff]  ;;  %v1453_v25 = vshll.u32 %v1452_v23, 16 }
 0x3af   : > { %2290 = vmatmul.mubr.msk.f32.gmra.mxu1 %vm1235_vm13, %v2788_v41  ;;  %2449 = vmatpush3.msra.mxu0 %v1590_v18  ;;  %vm1113_vm14 = vcmp.eq.s32.totalorder %v3205_v13, %v1105_v26  ;;  %vm1112_vm15 = vcmp.eq.s32.totalorder %v3202_v6, %v1105_v26  ;;  %v1216_v31 = vadd.s32 %v1215_v55, %v1213_v20  ;;  %v1136_v36 = vsel %vm1130_vm6, %v1105_v26, 0 }
 0x3b0   : > { %2475 = vmatpush3.msra.mxu1 %v1631_v1  ;;  %v1307_v17 = vpop.xlane.xlu0 %1306  ;;  %2285 = vmatprep.mubr.msk.f32.mxu0 %vm1113_vm14, %v2788_v41  ;;  %v1228_v34 = vpop.xlane.xlu1 %1227  ;;  %vm1511_vm6 = vcmp.eq.s32.totalorder %v3202_v6, 3  ;;  %v1358_v55 = vshll.u32 %v1357_v19, 16 }
 0x3b1   : > { %v1308_v50 = vcvt.f32.s32 %v1307_v17  ;;  %2476 = vmatprep.subr.mxu1 %v1646_v62  ;;  %2450 = vmatprep.subr.mxu0 %v1605_v12  ;;  %v3520_v29 = vsel %vm1257_vm7, %v1216_v31, %v1135_v3  ;;  %v1229_v39 = vcvt.f32.s32 %v1228_v34  ;;  %vm1238_vm1 = vcmp.eq.s32.totalorder %v3205_v13, %v1216_v31  ;;  %v1624_v17 = vld [vmem:[#allocation5 + $0x330] sm:$0xff] }
 0x3b2   : > { %2477 = vmatpush3.msra.mxu1 %v1630_v16  ;;  %2286 = vmatmul.mubr.msk.f32.gmra.mxu0 %vm1112_vm15, %v2788_v41  ;;  %vm1237_vm2 = vcmp.eq.s32.totalorder %v3202_v6, %v1216_v31  ;;  %v1640_v16 = vld [vmem:[#allocation5 + $0x3b0] sm:$0xff] }
 0x3b3   : > { %v3528_v53 = vadd.s32 %v1310_v22, %v1308_v50  ;;  %2291 = vmatprep.mubr.msk.f32.mxu1 %vm1238_vm1, %v2788_v41  ;;  %2478 = vmatprep.subr.mxu1 %v1645_v27  ;;  %v1232_v52 = vadd.s32 %v1231_v24, %v1229_v39  ;;  %v1469_v22 = vshll.u32 %v1468_v21, 16  ;;  %v1639_v50 = vld [vmem:[#allocation5 + $0x3a8] sm:$0xff]  ;;  %v1638_v39 = vld [vmem:[#allocation5 + $0x3a0] sm:$0xff] }
 0x3b4   : > { %2292 = vmatmul.mubr.msk.f32.gmra.mxu1 %vm1237_vm2, %v2788_v41  ;;  %2451 = vmatpush3.msra.mxu0 %v1589_v44  ;;  %v1323_v32 = vpop.xlane.xlu0 %1322 }
 0x3b5   : > { %v1387_v33 = vsel %vm1384_vm0, %v3528_v53, %v3486_v14  ;;  %2479 = vmatpush3.msra.mxu1 %v1629_v42  ;;  %2452 = vmatprep.subr.mxu0 %v1604_v28  ;;  %v1324_v58 = vcvt.f32.s32 %v1323_v32  ;;  %vm1361_vm3 = vcmp.eq.s32.totalorder %v3205_v13, %v3528_v53  ;;  %v3544_v57 = vsel %vm1257_vm7, %v1232_v52, %v1136_v36 }
 0x3b6   : > { %2480 = vmatprep.subr.mxu1 %v1644_v40  ;;  %v1434_v0 = vpop.xlane.xlu1 %1433  ;;  %2453 = vmatpush3.msra.mxu0 %v1588_v37  ;;  %vm1240_vm4 = vcmp.eq.s32.totalorder %v3205_v13, %v1232_v52  ;;  %vm1239_vm5 = vcmp.eq.s32.totalorder %v3202_v6, %v1232_v52  ;;  %v1437_v14 = vshll.u32 %v1436_v35, 16  ;;  %vm1994_vm7 = vcmask 31744   ;;  %v1622_v35 = vld [vmem:[#allocation5 + $0x320] sm:$0xff] }
 0x3b7   : > { %v3548_v59 = vadd.s32 %v1326_v51, %v1324_v58  ;;  %v1435_v7 = vcvt.f32.s32 %v1434_v0  ;;  %2481 = vmatpush3.msra.mxu1 %v1628_v61  ;;  %2293 = vmatprep.mubr.msk.f32.mxu1 %vm1240_vm4, %v2788_v41  ;;  %vm1360_vm9 = vcmp.eq.s32.totalorder %v3202_v6, %v3528_v53  ;;  %v1485_v42 = vshll.u32 %v1484_v30, 16  ;;  %v1637_v51 = vld [vmem:[#allocation5 + $0x398] sm:$0xff]  ;;  %v1636_v61 = vld [vmem:[#allocation5 + $0x390] sm:$0xff]  ;;  %v1635_v0 = vld [vmem:[#allocation5 + $0x388] sm:$0xff] }
 0x3b8   : > { %2454 = vmatprep.subr.mxu0 %v1603_v56  ;;  %2295 = vmatprep.mubr.msk.f32.mxu0 %vm1361_vm3, %v2788_v41  ;;  %v1339_v11 = vpop.xlane.xlu0 %1338  ;;  %v1620_v58 = vld [vmem:[#allocation5 + $0x310] sm:$0xff] }
 0x3b9   : > { %v1388_v47 = vsel %vm1384_vm0, %v3548_v59, %v3499_v45  ;;  %v3568_v9 = vadd.s32 %v1437_v14, %v1435_v7  ;;  %2482 = vmatprep.subr.mxu1 %v1643_v48  ;;  %2294 = vmatmul.mubr.msk.f32.gmra.mxu1 %vm1239_vm5, %v2788_v41  ;;  %v1340_v4 = vcvt.f32.s32 %v1339_v11  ;;  %vm1363_vm8 = vcmp.eq.s32.totalorder %v3205_v13, %v3548_v59  ;;  %v1619_v14 = vld [vmem:[#allocation5 + $0x308] sm:$0xff] }
 0x3ba   : > { %2455 = vmatpush3.msra.mxu0 %v1587_v46  ;;  %2483 = vmatpush3.msra.mxu1 %v1627_v15  ;;  %v1450_v18 = vpop.xlane.xlu1 %1449  ;;  %vm1362_vm12 = vcmp.eq.s32.totalorder %v3202_v6, %v3548_v59  ;;  %v1618_v46 = vld [vmem:[#allocation5 + $0x300] sm:$0xff] }
 0x3bb   : > { %v1514_v45 = vsel %vm1511_vm6, %v3568_v9, %v1387_v33  ;;  %2456 = vmatprep.subr.mxu0 %v1602_v10  ;;  %v1343_v26 = vadd.s32 %v1342_v63, %v1340_v4  ;;  %2484 = vmatprep.subr.mxu1 %v1642_v60  ;;  %v1451_v49 = vcvt.f32.s32 %v1450_v18  ;;  %vm1488_vm10 = vcmp.eq.s32.totalorder %v3205_v13, %v3568_v9 }
 0x3bc   : > { %1995 = vst.msk [vmem:[%s3562_s23] sm:$0xff] %vm1994_vm7, %v1514_v45  ;;  %2457 = vmatpush3.msra.mxu0 %v1586_v5  ;;  %2485 = vmatpush3.msra.mxu1 %v1626_v8  ;;  %v1355_v1 = vpop.xlane.xlu0 %1354 }
 0x3bd   : > { %v1389_v20 = vsel %vm1384_vm0, %v1343_v26, %v3520_v29  ;;  %v3588_v62 = vadd.s32 %v1453_v25, %v1451_v49  ;;  %2296 = vmatmul.mubr.msk.f32.vlgmr.msra.gmra.mxu0 %vm1360_vm9, %v2788_v41  ;;  %2486 = vmatprep.subr.mxu1 %v1641_v43  ;;  %v1356_v12 = vcvt.f32.s32 %v1355_v1  ;;  %vm1365_vm11 = vcmp.eq.s32.totalorder %v3205_v13, %v1343_v26 }
 0x3be   : > { %2303 = vmatprep.mubr.msk.f32.mxu1 %vm1488_vm10, %v2788_v41  ;;  %2297 = vmatprep.mubr.msk.f32.mxu0 %vm1363_vm8, %v2788_v41  ;;  %v1466_v31 = vpop.xlane.xlu1 %1465  ;;  %vm1364_vm14 = vcmp.eq.s32.totalorder %v3202_v6, %v1343_v26 }
 0x3bf   : > { %v1515_v27 = vsel %vm1511_vm6, %v3588_v62, %v1388_v47  ;;  %2487 = vmatpush3.msra.mxu1 %v1625_v2  ;;  %v1359_v24 = vadd.s32 %v1358_v55, %v1356_v12  ;;  %v1467_v3 = vcvt.f32.s32 %v1466_v31  ;;  %vm1490_vm1 = vcmp.eq.s32.totalorder %v3205_v13, %v3588_v62 }
 0x3c0   : > { %1996 = vst.msk [vmem:[%s3562_s23 + $0x8] sm:$0xff] %vm1994_vm7, %v1515_v27  ;;  %2488 = vmatprep.subr.mxu1 %v1640_v16  ;;  %v2011_v34 = vpop.xlane.xlu0 %2010  ;;  %vm1489_vm2 = vcmp.eq.s32.totalorder %v3202_v6, %v3588_v62 }
 0x3c1   : > { %v3605_v44 = vadd.s32 %v1469_v22, %v1467_v3  ;;  %2489 = vmatpush3.msra.mxu1 %v1624_v17  ;;  %2298 = vmatmul.mubr.msk.f32.gmra.mxu0 %vm1362_vm12, %v2788_v41  ;;  %v2012_v29 = vrot.slane %v2011_v34, 4  ;;  %vm1367_vm13 = vcmp.eq.s32.totalorder %v3205_v13, %v1359_v24  ;;  %v1390_v36 = vsel %vm1384_vm0, %v1359_v24, %v3544_v57  ;;  %v1634_v57 = vld [vmem:[#allocation5 + $0x380] sm:$0xff] }
 0x3c2   : > { %2490 = vmatprep.subr.mxu1 %v1639_v50  ;;  %2299 = vmatprep.mubr.msk.f32.mxu0 %vm1365_vm11, %v2788_v41  ;;  %v1482_v28 = vpop.xlane.xlu1 %1481  ;;  %vm1366_vm15 = vcmp.eq.s32.totalorder %v3202_v6, %v1359_v24  ;;  %vm1487_vm0 = vcmp.eq.s32.totalorder %v3202_v6, %v3568_v9 }
 0x3c3   : > { %v1516_v53 = vsel %vm1511_vm6, %v3605_v44, %v1389_v20  ;;  %2491 = vmatpush3.msra.mxu1 %v1623_v54  ;;  %v2013_v40 = vadd.f32 %v2012_v29, %v2011_v34  ;;  %v1483_v37 = vcvt.f32.s32 %v1482_v28  ;;  %vm1492_vm3 = vcmp.eq.s32.totalorder %v3205_v13, %v3605_v44 }
 0x3c4   : > { %1997 = vst.msk [vmem:[%s3562_s23 + $0x10] sm:$0xff] %vm1994_vm7, %v1516_v53  ;;  %2492 = vmatprep.subr.mxu1 %v1638_v39  ;;  %vm1491_vm4 = vcmp.eq.s32.totalorder %v3202_v6, %v3605_v44 }
 0x3c5   : > { %v2014_v52 = vrot.slane %v2013_v40, 2  ;;  %v1486_v32 = vadd.s32 %v1485_v42, %v1483_v37  ;;  %2493 = vmatpush3.msra.mxu1 %v1622_v35  ;;  %2300 = vmatmul.mubr.msk.f32.gmra.mxu0 %vm1364_vm14, %v2788_v41 }
 0x3c6   : > { %2494 = vmatprep.subr.mxu1 %v1637_v51  ;;  %2301 = vmatprep.mubr.msk.f32.mxu0 %vm1367_vm13, %v2788_v41  ;;  %v2029_v33 = vpop.xlane.xlu1 %2028 }
 0x3c7   : > { %v1517_v56 = vsel %vm1511_vm6, %v1486_v32, %v1390_v36  ;;  %2495 = vmatpush3.msra.mxu1 %v1621_v38  ;;  %v2030_v23 = vrot.slane %v2029_v33, 4  ;;  %v2015_v48 = vadd.f32 %v2014_v52, %v2013_v40  ;;  %vm1494_vm5 = vcmp.eq.s32.totalorder %v3205_v13, %v1486_v32 }
 0x3c8   : > { %1998 = vst.msk [vmem:[%s3562_s23 + $0x18] sm:$0xff] %vm1994_vm7, %v1517_v56  ;;  %2496 = vmatprep.subr.mxu1 %v1636_v61  ;;  %vm1493_vm6 = vcmp.eq.s32.totalorder %v3202_v6, %v1486_v32  ;;  %s2685_s23 = sshll.u32 %s2789_s21, 4  ;;  %s2686_s23 = int_to_ptr.vmem [resolvable:$false] %s2685_s23 }
 0x3c9   : > { %v2031_v59 = vadd.f32 %v2030_v23, %v2029_v33  ;;  %2497 = vmatpush3.msra.mxu1 %v1620_v58  ;;  %2302 = vmatmul.mubr.msk.f32.gmra.mxu0 %vm1366_vm15, %v2788_v41  ;;  %v2016_v7 = vrot.slane %v2015_v48, 1  ;;  %p2688_p11 = scmp.lt.s32.totalorder %s2084_s10, %s2686_s23 }
 0x3ca   : > { %2498 = vmatprep.subr.mxu1 %v1635_v0 }
 0x3cb   : > { %v2032_v15 = vrot.slane %v2031_v59, 2  ;;  %2499 = vmatpush3.msra.mxu1 %v1619_v14  ;;  %v2017_v63 = vadd.f32 %v2016_v7, %v2015_v48 }
 0x3cc   : > { %2500 = vmatprep.subr.mxu1 %v1634_v57 }
 0x3cd   : > { %v2033_v19 = vadd.f32 %v2032_v15, %v2031_v59  ;;  %2501 = vmatpush3.msra.mxu1 %v1618_v46  ;;  %2552 = vpush %v2017_v63 }
 0x3ce   : > { %2304 = vmatmul.mubr.msk.f32.vlgmr.msra.gmra.mxu1 %vm1487_vm0, %v2788_v41 }
 0x3cf   : > { %2305 = vmatprep.mubr.msk.f32.mxu1 %vm1490_vm1, %v2788_v41  ;;  %v2034_v10 = vrot.slane %v2033_v19, 1 }
 0x3d1   : > { %v2035_v11 = vadd.f32 %v2034_v10, %v2033_v19 }
 0x3d2   : > { %2306 = vmatmul.mubr.msk.f32.gmra.mxu1 %vm1489_vm2, %v2788_v41 }
 0x3d3   : > { %2307 = vmatprep.mubr.msk.f32.mxu1 %vm1492_vm3, %v2788_v41  ;;  %2554 = vpush %v2035_v11 }
 0x3d6   : > { %2308 = vmatmul.mubr.msk.f32.gmra.mxu1 %vm1491_vm4, %v2788_v41 }
 0x3d7   : > { %2309 = vmatprep.mubr.msk.f32.mxu1 %vm1494_vm5, %v2788_v41 }
 0x3da   : > { %2310 = vmatmul.mubr.msk.f32.gmra.mxu1 %vm1493_vm6, %v2788_v41 }
 0x3fe   : > { %s2553_s19 = spop %2552 }
 0x3ff   : > { %v2019_v60 = vstv %s2553_s19  ;;  %s2687_s19 = scalar_lea.vmem %s2686_s23, 32 }
 0x400   : > { %p2689_p0 = scmp.lt.s32.totalorder %s2687_s19, %s2681_s13 }
 0x402   : > { %p2690_p1 = por %p2689_p0, %p2688_p11 }
 0x404   : > { %s2555_s20 = spop %2554  ;;  %p2691_p3 = pnand %p2690_p1, %p2684_p8 }
 0x405   : > { %v2037_v47 = vstv %s2555_s20 }
 0x406   : > { %v2038_v9 = vadd.f32 %v2037_v47, %v2019_v60 }
 0x408   : > { %2039 = vst [vmem:[%s346_s22] sm:$0x1] %v2038_v9 }
 0x409   : > { %2694 = shalt.err (!%p2691_p3)
}
 0x40a   : > { %s2695_s20 = scalar_lea.hbm %s2081_s26, 16  ;;  %s2699_s25 = scalar_lea.hbm %s3724_s8, 32 }
 0x40b   : > { %p2696_p2 = scmp.ne.s32.totalorder %s2081_s26, %s2695_s20  ;;  %p2700_p6 = scmp.lt.s32.totalorder %s2081_s26, %s3724_s8 }
 0x40c   : > { %p2701_p9 = scmp.lt.s32.totalorder %s2699_s25, %s2695_s20 }
 0x40d   : > { %p2697_p4 = pnand %p2696_p2, %p2876_p5 }
 0x40e   : > { %p2702_p7 = por %p2701_p9, %p2700_p6 }
 0x40f   : > { %p2698_p13 = pneg %p2697_p4 }
 0x411   : > { %p2703_p10 = pnand %p2702_p7, %p2698_p13 }
 0x413   : > { %2706 = shalt.err (!%p2703_p10)
}
 0x414   : > { %2565 = dma.vmem_to_hbm [thread:$0]  (%p2876_p5), %s2084_s10, 16, %s2081_s26, %s2051_s12  }
 0x415   : > { %s2225_s0 = sshll.u32 %s3647_s17, 5  ;;  %s2317_s12 = sshll.u32 %s2859_s9, 9 }
 0x416   : > { %s333_s26 = scalar_lea.vmem [#allocation7], %s2225_s0  ;;  %s3674_s23 = scalar_lea.hbm %s3722_s6, %s2317_s12 }
 0x417   : > { %s2063_s10 = sshll.u32 %s333_s26, 4  ;;  %s2041_s19 = scalar_lea.sflag [#allocation4], %s3647_s17  ;;  %s3669_s10 = int_to_ptr.vmem [resolvable:$true] %s2063_s10 }
 0x418   : > { %s2707_s20 = scalar_lea.vmem %s3669_s10, 512  ;;  %s2790_s9 = smov [#allocation7]  }
 0x419   : > { %p2708_p12 = scmp.ne.s32.totalorder %s3669_s10, %s2707_s20  ;;  %s2711_s22 = sshll.u32 %s2790_s9, 4  ;;  %s2712_s22 = int_to_ptr.vmem [resolvable:$false] %s2711_s22 }
 0x41a   : > { %s2713_s24 = scalar_lea.vmem %s2712_s22, 1024  ;;  %p2714_p0 = scmp.lt.s32.totalorder %s3669_s10, %s2712_s22 }
 0x41b   : > { %p2709_p8 = pnand %p2708_p12, %p2876_p5  ;;  %p2715_p1 = scmp.lt.s32.totalorder %s2713_s24, %s2707_s20 }
 0x41d   : > { %p2710_p11 = pneg %p2709_p8  ;;  %p2716_p3 = por %p2715_p1, %p2714_p0 }
 0x41f   : > { %p2717_p2 = pnand %p2716_p3, %p2710_p11 }
 0x455   : > { %v2370_v6 = vpop.f32.mrf.mxu0 }
 0x457   : > { %v2371_v13 = vpop.f32.mrf.mxu0 }
 0x458   : > { %v2372_v31 = vadd.f32 %v2371_v13, %v2370_v6 }
 0x459   : > { %v2373_v41 = vpop.f32.mrf.mxu0 }
 0x45b   : > { %v2374_v4 = vpop.f32.mrf.mxu0 }
 0x45c   : > { %v2375_v34 = vadd.f32 %v2374_v4, %v2373_v41 }
 0x46a   : > { %v2414_v8 = vpop.f32.mrf.mxu1 }
 0x46c   : > { %v2415_v21 = vpop.f32.mrf.mxu1 }
 0x46d   : > { %v2416_v22 = vadd.f32 %v2415_v21, %v2414_v8 }
 0x46e   : > { %v2376_v5 = vpop.f32.mrf.mxu0 }
 0x46f   : > { %v2417_v43 = vpop.f32.mrf.mxu1  ;;  %v1802_v3 = vadd.f32 %v2416_v22, %v2372_v31 }
 0x470   : > { %v2377_v25 = vpop.f32.mrf.mxu0 }
 0x471   : > { %v2418_v26 = vpop.f32.mrf.mxu1  ;;  %v2378_v51 = vadd.f32 %v2377_v25, %v2376_v5 }
 0x472   : > { %v2379_v18 = vpop.f32.mrf.mxu0  ;;  %v2419_v50 = vadd.f32 %v2418_v26, %v2417_v43 }
 0x474   : > { %v2380_v45 = vpop.f32.mrf.mxu0  ;;  %v2420_v1 = vpop.f32.mrf.mxu1  ;;  %v1807_v35 = vadd.f32 %v2419_v50, %v2375_v34 }
 0x475   : > { %v2381_v0 = vadd.f32 %v2380_v45, %v2379_v18 }
 0x476   : > { %v2421_v20 = vpop.f32.mrf.mxu1 }
 0x477   : > { %v2422_v53 = vadd.f32 %v2421_v20, %v2420_v1 }
 0x479   : > { %v2423_v12 = vpop.f32.mrf.mxu1  ;;  %v1812_v33 = vadd.f32 %v2422_v53, %v2378_v51 }
 0x47b   : > { %v2424_v30 = vpop.f32.mrf.mxu1 }
 0x47c   : > { %v2425_v58 = vadd.f32 %v2424_v30, %v2423_v12 }
 0x47d   : > { %v2458_v49 = vpop.f32.mrf.mxu0 }
 0x47e   : > { %v1817_v7 = vadd.f32 %v2425_v58, %v2381_v0 }
 0x47f   : > { %v2459_v2 = vpop.f32.mrf.mxu0 }
 0x480   : > { %v2460_v17 = vadd.f32 %v2459_v2, %v2458_v49 }
 0x481   : > { %v2461_v55 = vpop.f32.mrf.mxu0 }
 0x482   : > { %v1887_v44 = vadd.f32 %v2460_v17, %v1802_v3 }
 0x483   : > { %v2462_v62 = vpop.f32.mrf.mxu0 }
 0x484   : > { %v2463_v29 = vadd.f32 %v2462_v62, %v2461_v55 }
 0x485   : > { %v2464_v16 = vpop.f32.mrf.mxu0 }
 0x486   : > { %v1892_v38 = vadd.f32 %v2463_v29, %v1807_v35 }
 0x487   : > { %v2465_v27 = vpop.f32.mrf.mxu0 }
 0x488   : > { %v2466_v52 = vadd.f32 %v2465_v27, %v2464_v16 }
 0x489   : > { %v2467_v42 = vpop.f32.mrf.mxu0 }
 0x48a   : > { %v1897_v48 = vadd.f32 %v2466_v52, %v1812_v33 }
 0x48b   : > { %v2468_v61 = vpop.f32.mrf.mxu0 }
 0x48c   : > { %v2469_v14 = vadd.f32 %v2468_v61, %v2467_v42 }
 0x48e   : > { %v2502_v24 = vpop.f32.mrf.mxu1  ;;  %v1902_v63 = vadd.f32 %v2469_v14, %v1817_v7 }
 0x490   : > { %v2503_v54 = vpop.f32.mrf.mxu1 }
 0x491   : > { %v2504_v39 = vadd.f32 %v2503_v54, %v2502_v24 }
 0x492   : > { %v2505_v28 = vpop.f32.mrf.mxu1 }
 0x493   : > { %v1972_v40 = vadd.f32 %v2504_v39, %v1887_v44 }
 0x494   : > { %v2506_v37 = vpop.f32.mrf.mxu1 }
 0x495   : > { %1990 = vst [vmem:[%s333_s26] sm:$0xff] %v1972_v40  ;;  %v2507_v32 = vadd.f32 %v2506_v37, %v2505_v28 }
 0x496   : > { %v2508_v36 = vpop.f32.mrf.mxu1 }
 0x497   : > { %v1977_v56 = vadd.f32 %v2507_v32, %v1892_v38 }
 0x498   : > { %v2509_v23 = vpop.f32.mrf.mxu1 }
 0x499   : > { %1991 = vst [vmem:[%s333_s26 + $0x8] sm:$0xff] %v1977_v56  ;;  %v2510_v59 = vadd.f32 %v2509_v23, %v2508_v36 }
 0x49a   : > { %v2511_v57 = vpop.f32.mrf.mxu1 }
 0x49b   : > { %v1982_v46 = vadd.f32 %v2510_v59, %v1897_v48 }
 0x49c   : > { %v2512_v15 = vpop.f32.mrf.mxu1 }
 0x49d   : > { %1992 = vst [vmem:[%s333_s26 + $0x10] sm:$0xff] %v1982_v46  ;;  %v2513_v19 = vadd.f32 %v2512_v15, %v2511_v57 }
 0x49f   : > { %v1987_v10 = vadd.f32 %v2513_v19, %v1902_v63 }
 0x4a1   : > { %1993 = vst [vmem:[%s333_s26 + $0x18] sm:$0xff] %v1987_v10 }
 0x4a2   : > { %2720 = shalt.err (!%p2717_p2)
}
 0x4a3   : > { %s2721_s25 = scalar_lea.hbm %s3674_s23, 512  ;;  %s2725_s26 = scalar_lea.hbm %s3722_s6, 1024 }
 0x4a4   : > { %p2722_p4 = scmp.ne.s32.totalorder %s3674_s23, %s2721_s25  ;;  %p2726_p9 = scmp.lt.s32.totalorder %s3674_s23, %s3722_s6 }
 0x4a5   : > { %p2727_p7 = scmp.lt.s32.totalorder %s2725_s26, %s2721_s25 }
 0x4a6   : > { %p2723_p13 = pnand %p2722_p4, %p2876_p5 }
 0x4a7   : > { %p2728_p10 = por %p2727_p7, %p2726_p9 }
 0x4a8   : > { %p2724_p6 = pneg %p2723_p13 }
 0x4aa   : > { %p2729_p12 = pnand %p2728_p10, %p2724_p6 }
 0x4ac   : > { %2732 = shalt.err (!%p2729_p12)
}
 0x4ad   : > { %s2791_s21 = smov 128   ;;  %s2792_s20 = smov 8  }
 0x4ae   : > { %2564 = dma.vmem_to_hbm [thread:$0]  (%p2876_p5), %s3669_s10, 512, %s3674_s23, %s2041_s19, %s2791_s21, %s2791_s21, %s2792_s20  }
 0x4af PF: > { %p2586_p8 = scmp.ge.s32.totalorder %s2779_s30, 2  ;;  %s2095_s9 = sand.u32 1, %s2767_s27  }
 0x4b0   : > { %p3736_p11 = scmp.ne.s32.totalorder %s3728_s16, 0  ;;  %s2096_s22 = scalar_lea.sflag [#allocation4], %s2095_s9 }
 0x4b2   : > { %p2576_p0 = pnand %p2586_p8, %p3736_p11 }
 0x4b4   : > { %p2577_p1 = pneg %p2576_p0 }
 0x4b6   : > { %2758 = dma.done.wait (%p2577_p1), %s2096_s22, 512  }
 0x4b7   : > { %2760 = vsyncadd (%p2577_p1), %s2096_s22, 4294966784  ;;  %s2113_s24 = scalar_lea.sflag [#allocation9], %s2095_s9 }
 0x4b8   : > { %2762 = dma.done.wait (%p2577_p1), %s2113_s24, 16  }
 0x4b9   : > { %2764 = vsyncadd (%p2577_p1), %s2113_s24, 4294967280  ;;  %p24_p5 = scmp.ge.s32.totalorder %s2863_s11, 4   ;;  %s3737_s27 = smov %s2771_s28 }
 0x4ba   : > { %s3738_s28 = smov %s2775_s29  ;;  %s3739_s29 = smov %s2874_s14 }
 0x4bb   : > { %s3740_s30 = smov %s2863_s11  ;;  %26 = sbr.rel (!%p24_p5) target bundleno = 9 (0x9), region = 117 }
 0x4c0   :  { %2117 = vsyncpa [#allocation3], 1 }
 0x4c1   :  { %2119 = vsyncpa [#allocation3 + $0x1], 1 }
 0x4c2   :  { %2120 = vsyncpa [#allocation6], 1 }
 0x4c3   :  { %2121 = vsyncpa [#allocation4], 1 }
 0x4c4   :  { %2123 = vsyncpa [#allocation4 + $0x1], 1 }
 0x4c5   :  { %2124 = vsyncpa [#allocation9], 1 }
 0x4c6   :  { %2126 = vsyncpa [#allocation9 + $0x1], 1 }

</bundles_post_ra>
